<compile_context>
chip_gen: v7x
topology: tpu7x:2x2x1
jax: 0.10.0
libtpu: 0.0.40
codegen_flags: <defaults>
</compile_context>

<pallas_src>
import functools

import jax
import jax.numpy as jnp
import numpy as np
from jax import lax
from jax.experimental import pallas as pl
from jax.experimental.pallas import tpu as pltpu


def _balrnn_recurrence_kernel(xp_ref, w_hh_ref, htop_ref, hfin_ref, h_ref, *,
                              num_layers, t_blk, sqrt_k, matmul_dtype, unroll):
    """One grid step == T_BLK timesteps of the recurrence.

    xp_ref   : (T_BLK, B, H) f32   precomputed x_t @ W_ih^T for this time block
    w_hh_ref : (L, H, H)           pre-transposed recurrent weights (W_hh[l]^T)
    htop_ref : (T_BLK, B, H) f32   top-layer hidden state per timestep
    hfin_ref : (L, B, H)     f32   final hidden state (resident output)
    h_ref    : VMEM (L, B, H) f32  hidden state, updated in place
    """
    g = pl.program_id(0)

    @pl.when(g == 0)
    def _():
        h_ref[...] = jnp.zeros_like(h_ref)

    def step(tt, carry):
        # layer 0: relu( sqrt(K) + x_t @ W_ih^T + h_{t-1}[0] @ W_hh[0]^T )
        pre0 = (sqrt_k + xp_ref[tt]
                + jnp.dot(h_ref[0].astype(matmul_dtype), w_hh_ref[0],
                          preferred_element_type=jnp.float32))
        h_ref[0] = jnp.maximum(pre0, 0.0)

        # layers > 0: relu( sqrt(K) + (h_t[l-1] + h_{t-1}[l]) @ W_hh[l]^T )
        # Single matmul — both terms contract against the same weight.
        # In-place update is correct because layers are processed in ascending
        # order: h_ref[l-1] already holds h_t, h_ref[l] still holds h_{t-1}.
        for layer in range(1, num_layers):
            h_sum = h_ref[layer - 1] + h_ref[layer]          # f32 VPU add
            pre = sqrt_k + jnp.dot(h_sum.astype(matmul_dtype), w_hh_ref[layer],
                                   preferred_element_type=jnp.float32)
            h_ref[layer] = jnp.maximum(pre, 0.0)

        # Top-layer activations per timestep (projection is hoisted outside).
        htop_ref[tt] = h_ref[num_layers - 1]
        return carry

    lax.fori_loop(0, t_blk, step, 0, unroll=unroll)

    # Resident output: only its value at the last grid step matters.
    @pl.when(g == pl.num_programs(0) - 1)
    def _():
        hfin_ref[...] = h_ref[...]


def _pick_time_block(seq_len, batch, hidden, *, max_block_bytes=2 << 20, cap=256):
    """Largest divisor of seq_len whose (T_BLK, B, H) f32 tile stays small."""
    bytes_per_step = max(1, batch * hidden * 4)
    cap = int(max(1, min(cap, max_block_bytes // bytes_per_step, seq_len)))
    best = 1
    for d in range(1, cap + 1):
        if seq_len % d == 0:
            best = d
    return best


def balrnn_forward(x, w_ih, w_hh, w_out, b_out, *, K, num_layers,
                   matmul_dtype=jnp.float32, time_block=None):
    """x: (B, S, I) batch_first.  Returns (output (B, S, I), h_final (L, B, H))."""
    B, S, I = x.shape
    L, H, _ = w_hh.shape
    assert L == num_layers

    f32 = jnp.float32
    x_tm = jnp.transpose(x, (1, 0, 2)).astype(f32)            # (S, B, I) time-major

    # Hoisted, loop-invariant input projection: one MXU-filling batched matmul.
    xp = jnp.einsum("sbi,hi->sbh",
                    x_tm.astype(matmul_dtype), w_ih.astype(matmul_dtype),
                    preferred_element_type=f32)                # (S, B, H) f32

    # Pre-transpose recurrent weights once (no per-timestep .T / XLU work).
    w_hh_t = jnp.transpose(w_hh, (0, 2, 1)).astype(matmul_dtype)   # (L, H, H)

    t_blk = time_block if time_block is not None else _pick_time_block(S, B, H)
    assert S % t_blk == 0, "time_block must divide the sequence length"
    grid = (S // t_blk,)

    # VMEM budget (v7x only has 64 MiB): resident weights + double-buffered time
    # tiles + resident output + scratch, with 2x headroom, capped at 64 MiB.
    # TODO(synk): for large L*H*H (e.g. H >= 2048), tile w_hh over the layer /
    # contraction axes instead of keeping it whole-resident in VMEM.
    w_itemsize = jnp.dtype(matmul_dtype).itemsize
    vmem_needed = (2 * 2 * t_blk * B * H * 4       # xp in + h_top out, 2x buffered
                   + 2 * L * H * H * w_itemsize    # w_hh (assume 2 buffers)
                   + 2 * L * B * H * 4             # hfin resident output
                   + L * B * H * 4)                # hidden-state scratch
    vmem_limit = int(min(64 * 1024 * 1024, max(32 * 1024 * 1024, 2 * vmem_needed)))

    kernel = functools.partial(
        _balrnn_recurrence_kernel,
        num_layers=num_layers, t_blk=t_blk, sqrt_k=float(np.sqrt(K)),
        matmul_dtype=matmul_dtype, unroll=min(t_blk, 8))

    h_top, h_final = pl.pallas_call(
        kernel,
        out_shape=(jax.ShapeDtypeStruct((S, B, H), f32),
                   jax.ShapeDtypeStruct((L, B, H), f32)),
        grid_spec=pltpu.PrefetchScalarGridSpec(
            num_scalar_prefetch=0,
            grid=grid,
            in_specs=[
                pl.BlockSpec((t_blk, B, H), lambda g: (g, 0, 0)),   # xp time block
                pl.BlockSpec((L, H, H), lambda g: (0, 0, 0)),       # w_hh^T, whole & resident
            ],
            out_specs=[
                pl.BlockSpec((t_blk, B, H), lambda g: (g, 0, 0)),   # h_top time block
                pl.BlockSpec((L, B, H), lambda g: (0, 0, 0)),       # final hidden state
            ],
            scratch_shapes=[
                pltpu.VMEM((L, B, H), f32),                         # in-place hidden state
            ],
        ),
        compiler_params=pltpu.CompilerParams(
            dimension_semantics=("arbitrary",),    # time recurrence is sequential
            vmem_limit_bytes=vmem_limit),
    )(xp, w_hh_t)

    # Hoisted output projection over the whole sequence: one big batched matmul
    # (parallel across both TensorCores on v7x, MXU-filling on v5e/v6e).
    out = jnp.einsum("sbh,ih->sbi",
                     h_top.astype(matmul_dtype), w_out.astype(matmul_dtype),
                     preferred_element_type=f32) + b_out.astype(f32)
    return jnp.transpose(out, (1, 0, 2)), h_final


def balrnn_reference(x, w_ih, w_hh, w_out, b_out, *, K, num_layers):
    """Pure-JAX re-implementation of BalRNN.forward for correctness checking.

    Layers > 0 use the distributivity-fused form (h_t[l-1] + h_{t-1}[l]) @ W^T,
    which is algebraically identical to the module's two matmuls and mirrors
    the kernel's associativity so the f32 check can stay tight.
    """
    x_tm = jnp.transpose(x, (1, 0, 2))
    S, B, _ = x_tm.shape
    H = w_hh.shape[-1]
    sqrt_k = jnp.float32(np.sqrt(K))
    h_prev = jnp.zeros((num_layers, B, H), jnp.float32)
    outs = []
    for t in range(S):
        h_list = []
        for layer in range(num_layers):
            if layer == 0:
                pre = sqrt_k + x_tm[t] @ w_ih.T + h_prev[0] @ w_hh[0].T
            else:
                pre = sqrt_k + (h_list[layer - 1] + h_prev[layer]) @ w_hh[layer].T
            h_list.append(jnp.maximum(pre, 0.0))
        h_prev = jnp.stack(h_list)
        outs.append(h_list[-1])
    out = jnp.transpose(jnp.stack(outs), (1, 0, 2)) @ w_out.T + b_out
    return out, h_prev


if __name__ == "__main__":
    # Small, module-consistent shapes.
    batch, seq, input_size, hidden_size, num_layers = 2, 8, 16, 32, 2
    K, JI0, JII = 10, 0.4, -0.1

    key = jax.random.PRNGKey(0)
    k_ih, k_hh, k_wo, k_bo, k_x = jax.random.split(key, 5)

    # Deterministic parameter init mirroring the module's shapes / sparsity:
    #   weight_ih: (H, I), entries JI0/sqrt(K) present with prob K/I.
    #   weight_hh: (L, H, H), entries JII/sqrt(K) present with prob K/H.
    # TODO(synk): the per-row "first sqrt(K) indices rescaled" trainable-subset
    # detail of initialize_masked_weight is simplified in this demo init.
    w_ih = (jax.random.bernoulli(k_ih, K / input_size, (hidden_size, input_size))
            .astype(jnp.float32) * (JI0 / np.sqrt(K)))
    w_hh = (jax.random.bernoulli(k_hh, K / hidden_size,
                                 (num_layers, hidden_size, hidden_size))
            .astype(jnp.float32) * (JII / np.sqrt(K)))
    # output Linear(hidden_size, input_size)
    w_out = jax.random.normal(k_wo, (input_size, hidden_size), jnp.float32) / np.sqrt(hidden_size)
    b_out = jax.random.normal(k_bo, (input_size,), jnp.float32) * 0.01

    x = jax.random.normal(k_x, (batch, seq, input_size), jnp.float32)

    # --- f32 path (tight check against the pure-JAX reference) ---
    out, h_final = balrnn_forward(x, w_ih, w_hh, w_out, b_out,
                                  K=K, num_layers=num_layers,
                                  matmul_dtype=jnp.float32)
    jax.block_until_ready((out, h_final))

    out_ref, h_fin_ref = balrnn_reference(x, w_ih, w_hh, w_out, b_out,
                                          K=K, num_layers=num_layers)
    assert out.shape == (batch, seq, input_size)
    assert h_final.shape == (num_layers, batch, hidden_size)
    assert jnp.allclose(out, out_ref, rtol=1e-4, atol=1e-4)
    assert jnp.allclose(h_final, h_fin_ref, rtol=1e-4, atol=1e-4)

    # --- bf16 MXU operands with f32 accumulation (loose tolerance) ---
    out_bf, h_bf = balrnn_forward(x, w_ih, w_hh, w_out, b_out,
                                  K=K, num_layers=num_layers,
                                  matmul_dtype=jnp.bfloat16)
    jax.block_until_ready((out_bf, h_bf))
    assert jnp.allclose(out_bf, out_ref, rtol=0.1, atol=0.15)
    assert jnp.allclose(h_bf, h_fin_ref, rtol=0.1, atol=0.15)

    print("KERNEL_OK")
</pallas_src>

<mosaic_0001>
module attributes {stable_mosaic.version = 11 : i64} {
  func.func @_balrnn_recurrence_kernel(%arg0: i32, %arg1: memref<8x2x32xf32, #tpu.memory_space<vmem>>, %arg2: memref<2x32x32xf32, #tpu.memory_space<vmem>>, %arg3: memref<8x2x32xf32, #tpu.memory_space<vmem>>, %arg4: memref<2x2x32xf32, #tpu.memory_space<vmem>>, %arg5: memref<2x2x32xf32, #tpu.memory_space<vmem>>) attributes {dimension_semantics = [#tpu.dimension_semantics<arbitrary>], iteration_bounds = array<i64: 1>, scalar_prefetch = 0 : i64, scratch_operands = 1 : i64, tpu.core_type = #tpu.core_type<tc>, window_params = [{transform_indices = @transform_0, window_bounds = array<i64: 8, 2, 32>}, {pipeline_mode = #tpu.pipeline_mode<synchronous>, transform_indices = @transform_1, window_bounds = array<i64: 2, 32, 32>}, {transform_indices = @transform_2, window_bounds = array<i64: 8, 2, 32>}, {pipeline_mode = #tpu.pipeline_mode<synchronous>, transform_indices = @transform_3, window_bounds = array<i64: 2, 2, 32>}]} {
    %c0_i32 = arith.constant 0 : i32
    %0 = arith.cmpi eq, %arg0, %c0_i32 : i32
    %1 = arith.extui %0 : i1 to i32
    %c0_i32_0 = arith.constant 0 : i32
    %2 = arith.cmpi ne, %1, %c0_i32_0 : i32
    scf.if %2 {
      %cst_273 = arith.constant 0.000000e+00 : f32
      %302 = vector.broadcast %cst_273 : f32 to vector<2x2x32xf32>
      %c0_274 = arith.constant 0 : index
      %c0_275 = arith.constant 0 : index
      %c0_276 = arith.constant 0 : index
      %303 = vector.load %arg5[%c0_274, %c0_275, %c0_276] : memref<2x2x32xf32, #tpu.memory_space<vmem>>, vector<2x2x32xf32>
      tpu.vector_store %arg5[%c0_274, %c0_275, %c0_276], %302 {strides = array<i32>} : memref<2x2x32xf32, #tpu.memory_space<vmem>>, vector<2x2x32xf32>,
    } else {
    }
    %c0_i32_1 = arith.constant 0 : i32
    %3 = arith.index_cast %c0_i32_1 : i32 to index
    %c0 = arith.constant 0 : index
    %c0_2 = arith.constant 0 : index
    %4 = vector.load %arg1[%3, %c0, %c0_2] : memref<8x2x32xf32, #tpu.memory_space<vmem>>, vector<1x2x32xf32>
    %5 = vector.shape_cast %4 : vector<1x2x32xf32> to vector<2x32xf32>
    %cst = arith.constant 3.1622777 : f32
    %6 = vector.broadcast %cst : f32 to vector<2x32xf32>
    %7 = arith.addf %6, %5 : vector<2x32xf32>
    %c0_3 = arith.constant 0 : index
    %c0_4 = arith.constant 0 : index
    %c0_5 = arith.constant 0 : index
    %8 = vector.load %arg5[%c0_3, %c0_4, %c0_5] : memref<2x2x32xf32, #tpu.memory_space<vmem>>, vector<1x2x32xf32>
    %9 = vector.shape_cast %8 : vector<1x2x32xf32> to vector<2x32xf32>
    %c0_6 = arith.constant 0 : index
    %c0_7 = arith.constant 0 : index
    %c0_8 = arith.constant 0 : index
    %10 = vector.load %arg2[%c0_6, %c0_7, %c0_8] : memref<2x32x32xf32, #tpu.memory_space<vmem>>, vector<1x32x32xf32>
    %11 = vector.shape_cast %10 : vector<1x32x32xf32> to vector<32x32xf32>
    %cst_9 = arith.constant dense<0.000000e+00> : vector<2x32xf32>
    %12 = tpu.matmul %9, %11, %cst_9 {dimension_numbers = #tpu.dot_dimension_numbers<[1], [0], [0], [1], [0, 0, 1, 1], [], []>} : vector<2x32xf32>, vector<32x32xf32>, vector<2x32xf32> -> vector<2x32xf32>
    %13 = arith.addf %7, %12 : vector<2x32xf32>
    %cst_10 = arith.constant 0.000000e+00 : f32
    %14 = vector.broadcast %cst_10 : f32 to vector<2x32xf32>
    %15 = arith.maximumf %13, %14 : vector<2x32xf32>
    %c0_11 = arith.constant 0 : index
    %c0_12 = arith.constant 0 : index
    %c0_13 = arith.constant 0 : index
    %16 = vector.load %arg5[%c0_11, %c0_12, %c0_13] : memref<2x2x32xf32, #tpu.memory_space<vmem>>, vector<1x2x32xf32>
    %17 = vector.shape_cast %16 : vector<1x2x32xf32> to vector<2x32xf32>
    %18 = vector.shape_cast %15 : vector<2x32xf32> to vector<1x2x32xf32>
    tpu.vector_store %arg5[%c0_11, %c0_12, %c0_13], %18 {strides = array<i32>} : memref<2x2x32xf32, #tpu.memory_space<vmem>>, vector<1x2x32xf32>,
    %c0_14 = arith.constant 0 : index
    %c0_15 = arith.constant 0 : index
    %c0_16 = arith.constant 0 : index
    %19 = vector.load %arg5[%c0_14, %c0_15, %c0_16] : memref<2x2x32xf32, #tpu.memory_space<vmem>>, vector<1x2x32xf32>
    %20 = vector.shape_cast %19 : vector<1x2x32xf32> to vector<2x32xf32>
    %c1 = arith.constant 1 : index
    %c0_17 = arith.constant 0 : index
    %c0_18 = arith.constant 0 : index
    %21 = vector.load %arg5[%c1, %c0_17, %c0_18] : memref<2x2x32xf32, #tpu.memory_space<vmem>>, vector<1x2x32xf32>
    %22 = vector.shape_cast %21 : vector<1x2x32xf32> to vector<2x32xf32>
    %23 = arith.addf %20, %22 : vector<2x32xf32>
    %c1_19 = arith.constant 1 : index
    %c0_20 = arith.constant 0 : index
    %c0_21 = arith.constant 0 : index
    %24 = vector.load %arg2[%c1_19, %c0_20, %c0_21] : memref<2x32x32xf32, #tpu.memory_space<vmem>>, vector<1x32x32xf32>
    %25 = vector.shape_cast %24 : vector<1x32x32xf32> to vector<32x32xf32>
    %cst_22 = arith.constant dense<0.000000e+00> : vector<2x32xf32>
    %26 = tpu.matmul %23, %25, %cst_22 {dimension_numbers = #tpu.dot_dimension_numbers<[1], [0], [0], [1], [0, 0, 1, 1], [], []>} : vector<2x32xf32>, vector<32x32xf32>, vector<2x32xf32> -> vector<2x32xf32>
    %cst_23 = arith.constant 3.1622777 : f32
    %27 = vector.broadcast %cst_23 : f32 to vector<2x32xf32>
    %28 = arith.addf %27, %26 : vector<2x32xf32>
    %cst_24 = arith.constant 0.000000e+00 : f32
    %29 = vector.broadcast %cst_24 : f32 to vector<2x32xf32>
    %30 = arith.maximumf %28, %29 : vector<2x32xf32>
    %c1_25 = arith.constant 1 : index
    %c0_26 = arith.constant 0 : index
    %c0_27 = arith.constant 0 : index
    %31 = vector.load %arg5[%c1_25, %c0_26, %c0_27] : memref<2x2x32xf32, #tpu.memory_space<vmem>>, vector<1x2x32xf32>
    %32 = vector.shape_cast %31 : vector<1x2x32xf32> to vector<2x32xf32>
    %33 = vector.shape_cast %30 : vector<2x32xf32> to vector<1x2x32xf32>
    tpu.vector_store %arg5[%c1_25, %c0_26, %c0_27], %33 {strides = array<i32>} : memref<2x2x32xf32, #tpu.memory_space<vmem>>, vector<1x2x32xf32>,
    %c1_28 = arith.constant 1 : index
    %c0_29 = arith.constant 0 : index
    %c0_30 = arith.constant 0 : index
    %34 = vector.load %arg5[%c1_28, %c0_29, %c0_30] : memref<2x2x32xf32, #tpu.memory_space<vmem>>, vector<1x2x32xf32>
    %35 = vector.shape_cast %34 : vector<1x2x32xf32> to vector<2x32xf32>
    %36 = arith.index_cast %c0_i32_1 : i32 to index
    %c0_31 = arith.constant 0 : index
    %c0_32 = arith.constant 0 : index
    %37 = vector.load %arg3[%36, %c0_31, %c0_32] : memref<8x2x32xf32, #tpu.memory_space<vmem>>, vector<1x2x32xf32>
    %38 = vector.shape_cast %37 : vector<1x2x32xf32> to vector<2x32xf32>
    %39 = vector.shape_cast %35 : vector<2x32xf32> to vector<1x2x32xf32>
    tpu.vector_store %arg3[%36, %c0_31, %c0_32], %39 {strides = array<i32>} : memref<8x2x32xf32, #tpu.memory_space<vmem>>, vector<1x2x32xf32>,
    %c1_i32 = arith.constant 1 : i32
    %40 = arith.index_cast %c1_i32 : i32 to index
    %c0_33 = arith.constant 0 : index
    %c0_34 = arith.constant 0 : index
    %41 = vector.load %arg1[%40, %c0_33, %c0_34] : memref<8x2x32xf32, #tpu.memory_space<vmem>>, vector<1x2x32xf32>
    %42 = vector.shape_cast %41 : vector<1x2x32xf32> to vector<2x32xf32>
    %cst_35 = arith.constant 3.1622777 : f32
    %43 = vector.broadcast %cst_35 : f32 to vector<2x32xf32>
    %44 = arith.addf %43, %42 : vector<2x32xf32>
    %c0_36 = arith.constant 0 : index
    %c0_37 = arith.constant 0 : index
    %c0_38 = arith.constant 0 : index
    %45 = vector.load %arg5[%c0_36, %c0_37, %c0_38] : memref<2x2x32xf32, #tpu.memory_space<vmem>>, vector<1x2x32xf32>
    %46 = vector.shape_cast %45 : vector<1x2x32xf32> to vector<2x32xf32>
    %c0_39 = arith.constant 0 : index
    %c0_40 = arith.constant 0 : index
    %c0_41 = arith.constant 0 : index
    %47 = vector.load %arg2[%c0_39, %c0_40, %c0_41] : memref<2x32x32xf32, #tpu.memory_space<vmem>>, vector<1x32x32xf32>
    %48 = vector.shape_cast %47 : vector<1x32x32xf32> to vector<32x32xf32>
    %cst_42 = arith.constant dense<0.000000e+00> : vector<2x32xf32>
    %49 = tpu.matmul %46, %48, %cst_42 {dimension_numbers = #tpu.dot_dimension_numbers<[1], [0], [0], [1], [0, 0, 1, 1], [], []>} : vector<2x32xf32>, vector<32x32xf32>, vector<2x32xf32> -> vector<2x32xf32>
    %50 = arith.addf %44, %49 : vector<2x32xf32>
    %cst_43 = arith.constant 0.000000e+00 : f32
    %51 = vector.broadcast %cst_43 : f32 to vector<2x32xf32>
    %52 = arith.maximumf %50, %51 : vector<2x32xf32>
    %c0_44 = arith.constant 0 : index
    %c0_45 = arith.constant 0 : index
    %c0_46 = arith.constant 0 : index
    %53 = vector.load %arg5[%c0_44, %c0_45, %c0_46] : memref<2x2x32xf32, #tpu.memory_space<vmem>>, vector<1x2x32xf32>
    %54 = vector.shape_cast %53 : vector<1x2x32xf32> to vector<2x32xf32>
    %55 = vector.shape_cast %52 : vector<2x32xf32> to vector<1x2x32xf32>
    tpu.vector_store %arg5[%c0_44, %c0_45, %c0_46], %55 {strides = array<i32>} : memref<2x2x32xf32, #tpu.memory_space<vmem>>, vector<1x2x32xf32>,
    %c0_47 = arith.constant 0 : index
    %c0_48 = arith.constant 0 : index
    %c0_49 = arith.constant 0 : index
    %56 = vector.load %arg5[%c0_47, %c0_48, %c0_49] : memref<2x2x32xf32, #tpu.memory_space<vmem>>, vector<1x2x32xf32>
    %57 = vector.shape_cast %56 : vector<1x2x32xf32> to vector<2x32xf32>
    %c1_50 = arith.constant 1 : index
    %c0_51 = arith.constant 0 : index
    %c0_52 = arith.constant 0 : index
    %58 = vector.load %arg5[%c1_50, %c0_51, %c0_52] : memref<2x2x32xf32, #tpu.memory_space<vmem>>, vector<1x2x32xf32>
    %59 = vector.shape_cast %58 : vector<1x2x32xf32> to vector<2x32xf32>
    %60 = arith.addf %57, %59 : vector<2x32xf32>
    %c1_53 = arith.constant 1 : index
    %c0_54 = arith.constant 0 : index
    %c0_55 = arith.constant 0 : index
    %61 = vector.load %arg2[%c1_53, %c0_54, %c0_55] : memref<2x32x32xf32, #tpu.memory_space<vmem>>, vector<1x32x32xf32>
    %62 = vector.shape_cast %61 : vector<1x32x32xf32> to vector<32x32xf32>
    %cst_56 = arith.constant dense<0.000000e+00> : vector<2x32xf32>
    %63 = tpu.matmul %60, %62, %cst_56 {dimension_numbers = #tpu.dot_dimension_numbers<[1], [0], [0], [1], [0, 0, 1, 1], [], []>} : vector<2x32xf32>, vector<32x32xf32>, vector<2x32xf32> -> vector<2x32xf32>
    %cst_57 = arith.constant 3.1622777 : f32
    %64 = vector.broadcast %cst_57 : f32 to vector<2x32xf32>
    %65 = arith.addf %64, %63 : vector<2x32xf32>
    %cst_58 = arith.constant 0.000000e+00 : f32
    %66 = vector.broadcast %cst_58 : f32 to vector<2x32xf32>
    %67 = arith.maximumf %65, %66 : vector<2x32xf32>
    %c1_59 = arith.constant 1 : index
    %c0_60 = arith.constant 0 : index
    %c0_61 = arith.constant 0 : index
    %68 = vector.load %arg5[%c1_59, %c0_60, %c0_61] : memref<2x2x32xf32, #tpu.memory_space<vmem>>, vector<1x2x32xf32>
    %69 = vector.shape_cast %68 : vector<1x2x32xf32> to vector<2x32xf32>
    %70 = vector.shape_cast %67 : vector<2x32xf32> to vector<1x2x32xf32>
    tpu.vector_store %arg5[%c1_59, %c0_60, %c0_61], %70 {strides = array<i32>} : memref<2x2x32xf32, #tpu.memory_space<vmem>>, vector<1x2x32xf32>,
    %c1_62 = arith.constant 1 : index
    %c0_63 = arith.constant 0 : index
    %c0_64 = arith.constant 0 : index
    %71 = vector.load %arg5[%c1_62, %c0_63, %c0_64] : memref<2x2x32xf32, #tpu.memory_space<vmem>>, vector<1x2x32xf32>
    %72 = vector.shape_cast %71 : vector<1x2x32xf32> to vector<2x32xf32>
    %73 = arith.index_cast %c1_i32 : i32 to index
    %c0_65 = arith.constant 0 : index
    %c0_66 = arith.constant 0 : index
    %74 = vector.load %arg3[%73, %c0_65, %c0_66] : memref<8x2x32xf32, #tpu.memory_space<vmem>>, vector<1x2x32xf32>
    %75 = vector.shape_cast %74 : vector<1x2x32xf32> to vector<2x32xf32>
    %76 = vector.shape_cast %72 : vector<2x32xf32> to vector<1x2x32xf32>
    tpu.vector_store %arg3[%73, %c0_65, %c0_66], %76 {strides = array<i32>} : memref<8x2x32xf32, #tpu.memory_space<vmem>>, vector<1x2x32xf32>,
    %c2_i32 = arith.constant 2 : i32
    %77 = arith.index_cast %c2_i32 : i32 to index
    %c0_67 = arith.constant 0 : index
    %c0_68 = arith.constant 0 : index
    %78 = vector.load %arg1[%77, %c0_67, %c0_68] : memref<8x2x32xf32, #tpu.memory_space<vmem>>, vector<1x2x32xf32>
    %79 = vector.shape_cast %78 : vector<1x2x32xf32> to vector<2x32xf32>
    %cst_69 = arith.constant 3.1622777 : f32
    %80 = vector.broadcast %cst_69 : f32 to vector<2x32xf32>
    %81 = arith.addf %80, %79 : vector<2x32xf32>
    %c0_70 = arith.constant 0 : index
    %c0_71 = arith.constant 0 : index
    %c0_72 = arith.constant 0 : index
    %82 = vector.load %arg5[%c0_70, %c0_71, %c0_72] : memref<2x2x32xf32, #tpu.memory_space<vmem>>, vector<1x2x32xf32>
    %83 = vector.shape_cast %82 : vector<1x2x32xf32> to vector<2x32xf32>
    %c0_73 = arith.constant 0 : index
    %c0_74 = arith.constant 0 : index
    %c0_75 = arith.constant 0 : index
    %84 = vector.load %arg2[%c0_73, %c0_74, %c0_75] : memref<2x32x32xf32, #tpu.memory_space<vmem>>, vector<1x32x32xf32>
    %85 = vector.shape_cast %84 : vector<1x32x32xf32> to vector<32x32xf32>
    %cst_76 = arith.constant dense<0.000000e+00> : vector<2x32xf32>
    %86 = tpu.matmul %83, %85, %cst_76 {dimension_numbers = #tpu.dot_dimension_numbers<[1], [0], [0], [1], [0, 0, 1, 1], [], []>} : vector<2x32xf32>, vector<32x32xf32>, vector<2x32xf32> -> vector<2x32xf32>
    %87 = arith.addf %81, %86 : vector<2x32xf32>
    %cst_77 = arith.constant 0.000000e+00 : f32
    %88 = vector.broadcast %cst_77 : f32 to vector<2x32xf32>
    %89 = arith.maximumf %87, %88 : vector<2x32xf32>
    %c0_78 = arith.constant 0 : index
    %c0_79 = arith.constant 0 : index
    %c0_80 = arith.constant 0 : index
    %90 = vector.load %arg5[%c0_78, %c0_79, %c0_80] : memref<2x2x32xf32, #tpu.memory_space<vmem>>, vector<1x2x32xf32>
    %91 = vector.shape_cast %90 : vector<1x2x32xf32> to vector<2x32xf32>
    %92 = vector.shape_cast %89 : vector<2x32xf32> to vector<1x2x32xf32>
    tpu.vector_store %arg5[%c0_78, %c0_79, %c0_80], %92 {strides = array<i32>} : memref<2x2x32xf32, #tpu.memory_space<vmem>>, vector<1x2x32xf32>,
    %c0_81 = arith.constant 0 : index
    %c0_82 = arith.constant 0 : index
    %c0_83 = arith.constant 0 : index
    %93 = vector.load %arg5[%c0_81, %c0_82, %c0_83] : memref<2x2x32xf32, #tpu.memory_space<vmem>>, vector<1x2x32xf32>
    %94 = vector.shape_cast %93 : vector<1x2x32xf32> to vector<2x32xf32>
    %c1_84 = arith.constant 1 : index
    %c0_85 = arith.constant 0 : index
    %c0_86 = arith.constant 0 : index
    %95 = vector.load %arg5[%c1_84, %c0_85, %c0_86] : memref<2x2x32xf32, #tpu.memory_space<vmem>>, vector<1x2x32xf32>
    %96 = vector.shape_cast %95 : vector<1x2x32xf32> to vector<2x32xf32>
    %97 = arith.addf %94, %96 : vector<2x32xf32>
    %c1_87 = arith.constant 1 : index
    %c0_88 = arith.constant 0 : index
    %c0_89 = arith.constant 0 : index
    %98 = vector.load %arg2[%c1_87, %c0_88, %c0_89] : memref<2x32x32xf32, #tpu.memory_space<vmem>>, vector<1x32x32xf32>
    %99 = vector.shape_cast %98 : vector<1x32x32xf32> to vector<32x32xf32>
    %cst_90 = arith.constant dense<0.000000e+00> : vector<2x32xf32>
    %100 = tpu.matmul %97, %99, %cst_90 {dimension_numbers = #tpu.dot_dimension_numbers<[1], [0], [0], [1], [0, 0, 1, 1], [], []>} : vector<2x32xf32>, vector<32x32xf32>, vector<2x32xf32> -> vector<2x32xf32>
    %cst_91 = arith.constant 3.1622777 : f32
    %101 = vector.broadcast %cst_91 : f32 to vector<2x32xf32>
    %102 = arith.addf %101, %100 : vector<2x32xf32>
    %cst_92 = arith.constant 0.000000e+00 : f32
    %103 = vector.broadcast %cst_92 : f32 to vector<2x32xf32>
    %104 = arith.maximumf %102, %103 : vector<2x32xf32>
    %c1_93 = arith.constant 1 : index
    %c0_94 = arith.constant 0 : index
    %c0_95 = arith.constant 0 : index
    %105 = vector.load %arg5[%c1_93, %c0_94, %c0_95] : memref<2x2x32xf32, #tpu.memory_space<vmem>>, vector<1x2x32xf32>
    %106 = vector.shape_cast %105 : vector<1x2x32xf32> to vector<2x32xf32>
    %107 = vector.shape_cast %104 : vector<2x32xf32> to vector<1x2x32xf32>
    tpu.vector_store %arg5[%c1_93, %c0_94, %c0_95], %107 {strides = array<i32>} : memref<2x2x32xf32, #tpu.memory_space<vmem>>, vector<1x2x32xf32>,
    %c1_96 = arith.constant 1 : index
    %c0_97 = arith.constant 0 : index
    %c0_98 = arith.constant 0 : index
    %108 = vector.load %arg5[%c1_96, %c0_97, %c0_98] : memref<2x2x32xf32, #tpu.memory_space<vmem>>, vector<1x2x32xf32>
    %109 = vector.shape_cast %108 : vector<1x2x32xf32> to vector<2x32xf32>
    %110 = arith.index_cast %c2_i32 : i32 to index
    %c0_99 = arith.constant 0 : index
    %c0_100 = arith.constant 0 : index
    %111 = vector.load %arg3[%110, %c0_99, %c0_100] : memref<8x2x32xf32, #tpu.memory_space<vmem>>, vector<1x2x32xf32>
    %112 = vector.shape_cast %111 : vector<1x2x32xf32> to vector<2x32xf32>
    %113 = vector.shape_cast %109 : vector<2x32xf32> to vector<1x2x32xf32>
    tpu.vector_store %arg3[%110, %c0_99, %c0_100], %113 {strides = array<i32>} : memref<8x2x32xf32, #tpu.memory_space<vmem>>, vector<1x2x32xf32>,
    %c3_i32 = arith.constant 3 : i32
    %114 = arith.index_cast %c3_i32 : i32 to index
    %c0_101 = arith.constant 0 : index
    %c0_102 = arith.constant 0 : index
    %115 = vector.load %arg1[%114, %c0_101, %c0_102] : memref<8x2x32xf32, #tpu.memory_space<vmem>>, vector<1x2x32xf32>
    %116 = vector.shape_cast %115 : vector<1x2x32xf32> to vector<2x32xf32>
    %cst_103 = arith.constant 3.1622777 : f32
    %117 = vector.broadcast %cst_103 : f32 to vector<2x32xf32>
    %118 = arith.addf %117, %116 : vector<2x32xf32>
    %c0_104 = arith.constant 0 : index
    %c0_105 = arith.constant 0 : index
    %c0_106 = arith.constant 0 : index
    %119 = vector.load %arg5[%c0_104, %c0_105, %c0_106] : memref<2x2x32xf32, #tpu.memory_space<vmem>>, vector<1x2x32xf32>
    %120 = vector.shape_cast %119 : vector<1x2x32xf32> to vector<2x32xf32>
    %c0_107 = arith.constant 0 : index
    %c0_108 = arith.constant 0 : index
    %c0_109 = arith.constant 0 : index
    %121 = vector.load %arg2[%c0_107, %c0_108, %c0_109] : memref<2x32x32xf32, #tpu.memory_space<vmem>>, vector<1x32x32xf32>
    %122 = vector.shape_cast %121 : vector<1x32x32xf32> to vector<32x32xf32>
    %cst_110 = arith.constant dense<0.000000e+00> : vector<2x32xf32>
    %123 = tpu.matmul %120, %122, %cst_110 {dimension_numbers = #tpu.dot_dimension_numbers<[1], [0], [0], [1], [0, 0, 1, 1], [], []>} : vector<2x32xf32>, vector<32x32xf32>, vector<2x32xf32> -> vector<2x32xf32>
    %124 = arith.addf %118, %123 : vector<2x32xf32>
    %cst_111 = arith.constant 0.000000e+00 : f32
    %125 = vector.broadcast %cst_111 : f32 to vector<2x32xf32>
    %126 = arith.maximumf %124, %125 : vector<2x32xf32>
    %c0_112 = arith.constant 0 : index
    %c0_113 = arith.constant 0 : index
    %c0_114 = arith.constant 0 : index
    %127 = vector.load %arg5[%c0_112, %c0_113, %c0_114] : memref<2x2x32xf32, #tpu.memory_space<vmem>>, vector<1x2x32xf32>
    %128 = vector.shape_cast %127 : vector<1x2x32xf32> to vector<2x32xf32>
    %129 = vector.shape_cast %126 : vector<2x32xf32> to vector<1x2x32xf32>
    tpu.vector_store %arg5[%c0_112, %c0_113, %c0_114], %129 {strides = array<i32>} : memref<2x2x32xf32, #tpu.memory_space<vmem>>, vector<1x2x32xf32>,
    %c0_115 = arith.constant 0 : index
    %c0_116 = arith.constant 0 : index
    %c0_117 = arith.constant 0 : index
    %130 = vector.load %arg5[%c0_115, %c0_116, %c0_117] : memref<2x2x32xf32, #tpu.memory_space<vmem>>, vector<1x2x32xf32>
    %131 = vector.shape_cast %130 : vector<1x2x32xf32> to vector<2x32xf32>
    %c1_118 = arith.constant 1 : index
    %c0_119 = arith.constant 0 : index
    %c0_120 = arith.constant 0 : index
    %132 = vector.load %arg5[%c1_118, %c0_119, %c0_120] : memref<2x2x32xf32, #tpu.memory_space<vmem>>, vector<1x2x32xf32>
    %133 = vector.shape_cast %132 : vector<1x2x32xf32> to vector<2x32xf32>
    %134 = arith.addf %131, %133 : vector<2x32xf32>
    %c1_121 = arith.constant 1 : index
    %c0_122 = arith.constant 0 : index
    %c0_123 = arith.constant 0 : index
    %135 = vector.load %arg2[%c1_121, %c0_122, %c0_123] : memref<2x32x32xf32, #tpu.memory_space<vmem>>, vector<1x32x32xf32>
    %136 = vector.shape_cast %135 : vector<1x32x32xf32> to vector<32x32xf32>
    %cst_124 = arith.constant dense<0.000000e+00> : vector<2x32xf32>
    %137 = tpu.matmul %134, %136, %cst_124 {dimension_numbers = #tpu.dot_dimension_numbers<[1], [0], [0], [1], [0, 0, 1, 1], [], []>} : vector<2x32xf32>, vector<32x32xf32>, vector<2x32xf32> -> vector<2x32xf32>
    %cst_125 = arith.constant 3.1622777 : f32
    %138 = vector.broadcast %cst_125 : f32 to vector<2x32xf32>
    %139 = arith.addf %138, %137 : vector<2x32xf32>
    %cst_126 = arith.constant 0.000000e+00 : f32
    %140 = vector.broadcast %cst_126 : f32 to vector<2x32xf32>
    %141 = arith.maximumf %139, %140 : vector<2x32xf32>
    %c1_127 = arith.constant 1 : index
    %c0_128 = arith.constant 0 : index
    %c0_129 = arith.constant 0 : index
    %142 = vector.load %arg5[%c1_127, %c0_128, %c0_129] : memref<2x2x32xf32, #tpu.memory_space<vmem>>, vector<1x2x32xf32>
    %143 = vector.shape_cast %142 : vector<1x2x32xf32> to vector<2x32xf32>
    %144 = vector.shape_cast %141 : vector<2x32xf32> to vector<1x2x32xf32>
    tpu.vector_store %arg5[%c1_127, %c0_128, %c0_129], %144 {strides = array<i32>} : memref<2x2x32xf32, #tpu.memory_space<vmem>>, vector<1x2x32xf32>,
    %c1_130 = arith.constant 1 : index
    %c0_131 = arith.constant 0 : index
    %c0_132 = arith.constant 0 : index
    %145 = vector.load %arg5[%c1_130, %c0_131, %c0_132] : memref<2x2x32xf32, #tpu.memory_space<vmem>>, vector<1x2x32xf32>
    %146 = vector.shape_cast %145 : vector<1x2x32xf32> to vector<2x32xf32>
    %147 = arith.index_cast %c3_i32 : i32 to index
    %c0_133 = arith.constant 0 : index
    %c0_134 = arith.constant 0 : index
    %148 = vector.load %arg3[%147, %c0_133, %c0_134] : memref<8x2x32xf32, #tpu.memory_space<vmem>>, vector<1x2x32xf32>
    %149 = vector.shape_cast %148 : vector<1x2x32xf32> to vector<2x32xf32>
    %150 = vector.shape_cast %146 : vector<2x32xf32> to vector<1x2x32xf32>
    tpu.vector_store %arg3[%147, %c0_133, %c0_134], %150 {strides = array<i32>} : memref<8x2x32xf32, #tpu.memory_space<vmem>>, vector<1x2x32xf32>,
    %c4_i32 = arith.constant 4 : i32
    %151 = arith.index_cast %c4_i32 : i32 to index
    %c0_135 = arith.constant 0 : index
    %c0_136 = arith.constant 0 : index
    %152 = vector.load %arg1[%151, %c0_135, %c0_136] : memref<8x2x32xf32, #tpu.memory_space<vmem>>, vector<1x2x32xf32>
    %153 = vector.shape_cast %152 : vector<1x2x32xf32> to vector<2x32xf32>
    %cst_137 = arith.constant 3.1622777 : f32
    %154 = vector.broadcast %cst_137 : f32 to vector<2x32xf32>
    %155 = arith.addf %154, %153 : vector<2x32xf32>
    %c0_138 = arith.constant 0 : index
    %c0_139 = arith.constant 0 : index
    %c0_140 = arith.constant 0 : index
    %156 = vector.load %arg5[%c0_138, %c0_139, %c0_140] : memref<2x2x32xf32, #tpu.memory_space<vmem>>, vector<1x2x32xf32>
    %157 = vector.shape_cast %156 : vector<1x2x32xf32> to vector<2x32xf32>
    %c0_141 = arith.constant 0 : index
    %c0_142 = arith.constant 0 : index
    %c0_143 = arith.constant 0 : index
    %158 = vector.load %arg2[%c0_141, %c0_142, %c0_143] : memref<2x32x32xf32, #tpu.memory_space<vmem>>, vector<1x32x32xf32>
    %159 = vector.shape_cast %158 : vector<1x32x32xf32> to vector<32x32xf32>
    %cst_144 = arith.constant dense<0.000000e+00> : vector<2x32xf32>
    %160 = tpu.matmul %157, %159, %cst_144 {dimension_numbers = #tpu.dot_dimension_numbers<[1], [0], [0], [1], [0, 0, 1, 1], [], []>} : vector<2x32xf32>, vector<32x32xf32>, vector<2x32xf32> -> vector<2x32xf32>
    %161 = arith.addf %155, %160 : vector<2x32xf32>
    %cst_145 = arith.constant 0.000000e+00 : f32
    %162 = vector.broadcast %cst_145 : f32 to vector<2x32xf32>
    %163 = arith.maximumf %161, %162 : vector<2x32xf32>
    %c0_146 = arith.constant 0 : index
    %c0_147 = arith.constant 0 : index
    %c0_148 = arith.constant 0 : index
    %164 = vector.load %arg5[%c0_146, %c0_147, %c0_148] : memref<2x2x32xf32, #tpu.memory_space<vmem>>, vector<1x2x32xf32>
    %165 = vector.shape_cast %164 : vector<1x2x32xf32> to vector<2x32xf32>
    %166 = vector.shape_cast %163 : vector<2x32xf32> to vector<1x2x32xf32>
    tpu.vector_store %arg5[%c0_146, %c0_147, %c0_148], %166 {strides = array<i32>} : memref<2x2x32xf32, #tpu.memory_space<vmem>>, vector<1x2x32xf32>,
    %c0_149 = arith.constant 0 : index
    %c0_150 = arith.constant 0 : index
    %c0_151 = arith.constant 0 : index
    %167 = vector.load %arg5[%c0_149, %c0_150, %c0_151] : memref<2x2x32xf32, #tpu.memory_space<vmem>>, vector<1x2x32xf32>
    %168 = vector.shape_cast %167 : vector<1x2x32xf32> to vector<2x32xf32>
    %c1_152 = arith.constant 1 : index
    %c0_153 = arith.constant 0 : index
    %c0_154 = arith.constant 0 : index
    %169 = vector.load %arg5[%c1_152, %c0_153, %c0_154] : memref<2x2x32xf32, #tpu.memory_space<vmem>>, vector<1x2x32xf32>
    %170 = vector.shape_cast %169 : vector<1x2x32xf32> to vector<2x32xf32>
    %171 = arith.addf %168, %170 : vector<2x32xf32>
    %c1_155 = arith.constant 1 : index
    %c0_156 = arith.constant 0 : index
    %c0_157 = arith.constant 0 : index
    %172 = vector.load %arg2[%c1_155, %c0_156, %c0_157] : memref<2x32x32xf32, #tpu.memory_space<vmem>>, vector<1x32x32xf32>
    %173 = vector.shape_cast %172 : vector<1x32x32xf32> to vector<32x32xf32>
    %cst_158 = arith.constant dense<0.000000e+00> : vector<2x32xf32>
    %174 = tpu.matmul %171, %173, %cst_158 {dimension_numbers = #tpu.dot_dimension_numbers<[1], [0], [0], [1], [0, 0, 1, 1], [], []>} : vector<2x32xf32>, vector<32x32xf32>, vector<2x32xf32> -> vector<2x32xf32>
    %cst_159 = arith.constant 3.1622777 : f32
    %175 = vector.broadcast %cst_159 : f32 to vector<2x32xf32>
    %176 = arith.addf %175, %174 : vector<2x32xf32>
    %cst_160 = arith.constant 0.000000e+00 : f32
    %177 = vector.broadcast %cst_160 : f32 to vector<2x32xf32>
    %178 = arith.maximumf %176, %177 : vector<2x32xf32>
    %c1_161 = arith.constant 1 : index
    %c0_162 = arith.constant 0 : index
    %c0_163 = arith.constant 0 : index
    %179 = vector.load %arg5[%c1_161, %c0_162, %c0_163] : memref<2x2x32xf32, #tpu.memory_space<vmem>>, vector<1x2x32xf32>
    %180 = vector.shape_cast %179 : vector<1x2x32xf32> to vector<2x32xf32>
    %181 = vector.shape_cast %178 : vector<2x32xf32> to vector<1x2x32xf32>
    tpu.vector_store %arg5[%c1_161, %c0_162, %c0_163], %181 {strides = array<i32>} : memref<2x2x32xf32, #tpu.memory_space<vmem>>, vector<1x2x32xf32>,
    %c1_164 = arith.constant 1 : index
    %c0_165 = arith.constant 0 : index
    %c0_166 = arith.constant 0 : index
    %182 = vector.load %arg5[%c1_164, %c0_165, %c0_166] : memref<2x2x32xf32, #tpu.memory_space<vmem>>, vector<1x2x32xf32>
    %183 = vector.shape_cast %182 : vector<1x2x32xf32> to vector<2x32xf32>
    %184 = arith.index_cast %c4_i32 : i32 to index
    %c0_167 = arith.constant 0 : index
    %c0_168 = arith.constant 0 : index
    %185 = vector.load %arg3[%184, %c0_167, %c0_168] : memref<8x2x32xf32, #tpu.memory_space<vmem>>, vector<1x2x32xf32>
    %186 = vector.shape_cast %185 : vector<1x2x32xf32> to vector<2x32xf32>
    %187 = vector.shape_cast %183 : vector<2x32xf32> to vector<1x2x32xf32>
    tpu.vector_store %arg3[%184, %c0_167, %c0_168], %187 {strides = array<i32>} : memref<8x2x32xf32, #tpu.memory_space<vmem>>, vector<1x2x32xf32>,
    %c5_i32 = arith.constant 5 : i32
    %188 = arith.index_cast %c5_i32 : i32 to index
    %c0_169 = arith.constant 0 : index
    %c0_170 = arith.constant 0 : index
    %189 = vector.load %arg1[%188, %c0_169, %c0_170] : memref<8x2x32xf32, #tpu.memory_space<vmem>>, vector<1x2x32xf32>
    %190 = vector.shape_cast %189 : vector<1x2x32xf32> to vector<2x32xf32>
    %cst_171 = arith.constant 3.1622777 : f32
    %191 = vector.broadcast %cst_171 : f32 to vector<2x32xf32>
    %192 = arith.addf %191, %190 : vector<2x32xf32>
    %c0_172 = arith.constant 0 : index
    %c0_173 = arith.constant 0 : index
    %c0_174 = arith.constant 0 : index
    %193 = vector.load %arg5[%c0_172, %c0_173, %c0_174] : memref<2x2x32xf32, #tpu.memory_space<vmem>>, vector<1x2x32xf32>
    %194 = vector.shape_cast %193 : vector<1x2x32xf32> to vector<2x32xf32>
    %c0_175 = arith.constant 0 : index
    %c0_176 = arith.constant 0 : index
    %c0_177 = arith.constant 0 : index
    %195 = vector.load %arg2[%c0_175, %c0_176, %c0_177] : memref<2x32x32xf32, #tpu.memory_space<vmem>>, vector<1x32x32xf32>
    %196 = vector.shape_cast %195 : vector<1x32x32xf32> to vector<32x32xf32>
    %cst_178 = arith.constant dense<0.000000e+00> : vector<2x32xf32>
    %197 = tpu.matmul %194, %196, %cst_178 {dimension_numbers = #tpu.dot_dimension_numbers<[1], [0], [0], [1], [0, 0, 1, 1], [], []>} : vector<2x32xf32>, vector<32x32xf32>, vector<2x32xf32> -> vector<2x32xf32>
    %198 = arith.addf %192, %197 : vector<2x32xf32>
    %cst_179 = arith.constant 0.000000e+00 : f32
    %199 = vector.broadcast %cst_179 : f32 to vector<2x32xf32>
    %200 = arith.maximumf %198, %199 : vector<2x32xf32>
    %c0_180 = arith.constant 0 : index
    %c0_181 = arith.constant 0 : index
    %c0_182 = arith.constant 0 : index
    %201 = vector.load %arg5[%c0_180, %c0_181, %c0_182] : memref<2x2x32xf32, #tpu.memory_space<vmem>>, vector<1x2x32xf32>
    %202 = vector.shape_cast %201 : vector<1x2x32xf32> to vector<2x32xf32>
    %203 = vector.shape_cast %200 : vector<2x32xf32> to vector<1x2x32xf32>
    tpu.vector_store %arg5[%c0_180, %c0_181, %c0_182], %203 {strides = array<i32>} : memref<2x2x32xf32, #tpu.memory_space<vmem>>, vector<1x2x32xf32>,
    %c0_183 = arith.constant 0 : index
    %c0_184 = arith.constant 0 : index
    %c0_185 = arith.constant 0 : index
    %204 = vector.load %arg5[%c0_183, %c0_184, %c0_185] : memref<2x2x32xf32, #tpu.memory_space<vmem>>, vector<1x2x32xf32>
    %205 = vector.shape_cast %204 : vector<1x2x32xf32> to vector<2x32xf32>
    %c1_186 = arith.constant 1 : index
    %c0_187 = arith.constant 0 : index
    %c0_188 = arith.constant 0 : index
    %206 = vector.load %arg5[%c1_186, %c0_187, %c0_188] : memref<2x2x32xf32, #tpu.memory_space<vmem>>, vector<1x2x32xf32>
    %207 = vector.shape_cast %206 : vector<1x2x32xf32> to vector<2x32xf32>
    %208 = arith.addf %205, %207 : vector<2x32xf32>
    %c1_189 = arith.constant 1 : index
    %c0_190 = arith.constant 0 : index
    %c0_191 = arith.constant 0 : index
    %209 = vector.load %arg2[%c1_189, %c0_190, %c0_191] : memref<2x32x32xf32, #tpu.memory_space<vmem>>, vector<1x32x32xf32>
    %210 = vector.shape_cast %209 : vector<1x32x32xf32> to vector<32x32xf32>
    %cst_192 = arith.constant dense<0.000000e+00> : vector<2x32xf32>
    %211 = tpu.matmul %208, %210, %cst_192 {dimension_numbers = #tpu.dot_dimension_numbers<[1], [0], [0], [1], [0, 0, 1, 1], [], []>} : vector<2x32xf32>, vector<32x32xf32>, vector<2x32xf32> -> vector<2x32xf32>
    %cst_193 = arith.constant 3.1622777 : f32
    %212 = vector.broadcast %cst_193 : f32 to vector<2x32xf32>
    %213 = arith.addf %212, %211 : vector<2x32xf32>
    %cst_194 = arith.constant 0.000000e+00 : f32
    %214 = vector.broadcast %cst_194 : f32 to vector<2x32xf32>
    %215 = arith.maximumf %213, %214 : vector<2x32xf32>
    %c1_195 = arith.constant 1 : index
    %c0_196 = arith.constant 0 : index
    %c0_197 = arith.constant 0 : index
    %216 = vector.load %arg5[%c1_195, %c0_196, %c0_197] : memref<2x2x32xf32, #tpu.memory_space<vmem>>, vector<1x2x32xf32>
    %217 = vector.shape_cast %216 : vector<1x2x32xf32> to vector<2x32xf32>
    %218 = vector.shape_cast %215 : vector<2x32xf32> to vector<1x2x32xf32>
    tpu.vector_store %arg5[%c1_195, %c0_196, %c0_197], %218 {strides = array<i32>} : memref<2x2x32xf32, #tpu.memory_space<vmem>>, vector<1x2x32xf32>,
    %c1_198 = arith.constant 1 : index
    %c0_199 = arith.constant 0 : index
    %c0_200 = arith.constant 0 : index
    %219 = vector.load %arg5[%c1_198, %c0_199, %c0_200] : memref<2x2x32xf32, #tpu.memory_space<vmem>>, vector<1x2x32xf32>
    %220 = vector.shape_cast %219 : vector<1x2x32xf32> to vector<2x32xf32>
    %221 = arith.index_cast %c5_i32 : i32 to index
    %c0_201 = arith.constant 0 : index
    %c0_202 = arith.constant 0 : index
    %222 = vector.load %arg3[%221, %c0_201, %c0_202] : memref<8x2x32xf32, #tpu.memory_space<vmem>>, vector<1x2x32xf32>
    %223 = vector.shape_cast %222 : vector<1x2x32xf32> to vector<2x32xf32>
    %224 = vector.shape_cast %220 : vector<2x32xf32> to vector<1x2x32xf32>
    tpu.vector_store %arg3[%221, %c0_201, %c0_202], %224 {strides = array<i32>} : memref<8x2x32xf32, #tpu.memory_space<vmem>>, vector<1x2x32xf32>,
    %c6_i32 = arith.constant 6 : i32
    %225 = arith.index_cast %c6_i32 : i32 to index
    %c0_203 = arith.constant 0 : index
    %c0_204 = arith.constant 0 : index
    %226 = vector.load %arg1[%225, %c0_203, %c0_204] : memref<8x2x32xf32, #tpu.memory_space<vmem>>, vector<1x2x32xf32>
    %227 = vector.shape_cast %226 : vector<1x2x32xf32> to vector<2x32xf32>
    %cst_205 = arith.constant 3.1622777 : f32
    %228 = vector.broadcast %cst_205 : f32 to vector<2x32xf32>
    %229 = arith.addf %228, %227 : vector<2x32xf32>
    %c0_206 = arith.constant 0 : index
    %c0_207 = arith.constant 0 : index
    %c0_208 = arith.constant 0 : index
    %230 = vector.load %arg5[%c0_206, %c0_207, %c0_208] : memref<2x2x32xf32, #tpu.memory_space<vmem>>, vector<1x2x32xf32>
    %231 = vector.shape_cast %230 : vector<1x2x32xf32> to vector<2x32xf32>
    %c0_209 = arith.constant 0 : index
    %c0_210 = arith.constant 0 : index
    %c0_211 = arith.constant 0 : index
    %232 = vector.load %arg2[%c0_209, %c0_210, %c0_211] : memref<2x32x32xf32, #tpu.memory_space<vmem>>, vector<1x32x32xf32>
    %233 = vector.shape_cast %232 : vector<1x32x32xf32> to vector<32x32xf32>
    %cst_212 = arith.constant dense<0.000000e+00> : vector<2x32xf32>
    %234 = tpu.matmul %231, %233, %cst_212 {dimension_numbers = #tpu.dot_dimension_numbers<[1], [0], [0], [1], [0, 0, 1, 1], [], []>} : vector<2x32xf32>, vector<32x32xf32>, vector<2x32xf32> -> vector<2x32xf32>
    %235 = arith.addf %229, %234 : vector<2x32xf32>
    %cst_213 = arith.constant 0.000000e+00 : f32
    %236 = vector.broadcast %cst_213 : f32 to vector<2x32xf32>
    %237 = arith.maximumf %235, %236 : vector<2x32xf32>
    %c0_214 = arith.constant 0 : index
    %c0_215 = arith.constant 0 : index
    %c0_216 = arith.constant 0 : index
    %238 = vector.load %arg5[%c0_214, %c0_215, %c0_216] : memref<2x2x32xf32, #tpu.memory_space<vmem>>, vector<1x2x32xf32>
    %239 = vector.shape_cast %238 : vector<1x2x32xf32> to vector<2x32xf32>
    %240 = vector.shape_cast %237 : vector<2x32xf32> to vector<1x2x32xf32>
    tpu.vector_store %arg5[%c0_214, %c0_215, %c0_216], %240 {strides = array<i32>} : memref<2x2x32xf32, #tpu.memory_space<vmem>>, vector<1x2x32xf32>,
    %c0_217 = arith.constant 0 : index
    %c0_218 = arith.constant 0 : index
    %c0_219 = arith.constant 0 : index
    %241 = vector.load %arg5[%c0_217, %c0_218, %c0_219] : memref<2x2x32xf32, #tpu.memory_space<vmem>>, vector<1x2x32xf32>
    %242 = vector.shape_cast %241 : vector<1x2x32xf32> to vector<2x32xf32>
    %c1_220 = arith.constant 1 : index
    %c0_221 = arith.constant 0 : index
    %c0_222 = arith.constant 0 : index
    %243 = vector.load %arg5[%c1_220, %c0_221, %c0_222] : memref<2x2x32xf32, #tpu.memory_space<vmem>>, vector<1x2x32xf32>
    %244 = vector.shape_cast %243 : vector<1x2x32xf32> to vector<2x32xf32>
    %245 = arith.addf %242, %244 : vector<2x32xf32>
    %c1_223 = arith.constant 1 : index
    %c0_224 = arith.constant 0 : index
    %c0_225 = arith.constant 0 : index
    %246 = vector.load %arg2[%c1_223, %c0_224, %c0_225] : memref<2x32x32xf32, #tpu.memory_space<vmem>>, vector<1x32x32xf32>
    %247 = vector.shape_cast %246 : vector<1x32x32xf32> to vector<32x32xf32>
    %cst_226 = arith.constant dense<0.000000e+00> : vector<2x32xf32>
    %248 = tpu.matmul %245, %247, %cst_226 {dimension_numbers = #tpu.dot_dimension_numbers<[1], [0], [0], [1], [0, 0, 1, 1], [], []>} : vector<2x32xf32>, vector<32x32xf32>, vector<2x32xf32> -> vector<2x32xf32>
    %cst_227 = arith.constant 3.1622777 : f32
    %249 = vector.broadcast %cst_227 : f32 to vector<2x32xf32>
    %250 = arith.addf %249, %248 : vector<2x32xf32>
    %cst_228 = arith.constant 0.000000e+00 : f32
    %251 = vector.broadcast %cst_228 : f32 to vector<2x32xf32>
    %252 = arith.maximumf %250, %251 : vector<2x32xf32>
    %c1_229 = arith.constant 1 : index
    %c0_230 = arith.constant 0 : index
    %c0_231 = arith.constant 0 : index
    %253 = vector.load %arg5[%c1_229, %c0_230, %c0_231] : memref<2x2x32xf32, #tpu.memory_space<vmem>>, vector<1x2x32xf32>
    %254 = vector.shape_cast %253 : vector<1x2x32xf32> to vector<2x32xf32>
    %255 = vector.shape_cast %252 : vector<2x32xf32> to vector<1x2x32xf32>
    tpu.vector_store %arg5[%c1_229, %c0_230, %c0_231], %255 {strides = array<i32>} : memref<2x2x32xf32, #tpu.memory_space<vmem>>, vector<1x2x32xf32>,
    %c1_232 = arith.constant 1 : index
    %c0_233 = arith.constant 0 : index
    %c0_234 = arith.constant 0 : index
    %256 = vector.load %arg5[%c1_232, %c0_233, %c0_234] : memref<2x2x32xf32, #tpu.memory_space<vmem>>, vector<1x2x32xf32>
    %257 = vector.shape_cast %256 : vector<1x2x32xf32> to vector<2x32xf32>
    %258 = arith.index_cast %c6_i32 : i32 to index
    %c0_235 = arith.constant 0 : index
    %c0_236 = arith.constant 0 : index
    %259 = vector.load %arg3[%258, %c0_235, %c0_236] : memref<8x2x32xf32, #tpu.memory_space<vmem>>, vector<1x2x32xf32>
    %260 = vector.shape_cast %259 : vector<1x2x32xf32> to vector<2x32xf32>
    %261 = vector.shape_cast %257 : vector<2x32xf32> to vector<1x2x32xf32>
    tpu.vector_store %arg3[%258, %c0_235, %c0_236], %261 {strides = array<i32>} : memref<8x2x32xf32, #tpu.memory_space<vmem>>, vector<1x2x32xf32>,
    %c7_i32 = arith.constant 7 : i32
    %262 = arith.index_cast %c7_i32 : i32 to index
    %c0_237 = arith.constant 0 : index
    %c0_238 = arith.constant 0 : index
    %263 = vector.load %arg1[%262, %c0_237, %c0_238] : memref<8x2x32xf32, #tpu.memory_space<vmem>>, vector<1x2x32xf32>
    %264 = vector.shape_cast %263 : vector<1x2x32xf32> to vector<2x32xf32>
    %cst_239 = arith.constant 3.1622777 : f32
    %265 = vector.broadcast %cst_239 : f32 to vector<2x32xf32>
    %266 = arith.addf %265, %264 : vector<2x32xf32>
    %c0_240 = arith.constant 0 : index
    %c0_241 = arith.constant 0 : index
    %c0_242 = arith.constant 0 : index
    %267 = vector.load %arg5[%c0_240, %c0_241, %c0_242] : memref<2x2x32xf32, #tpu.memory_space<vmem>>, vector<1x2x32xf32>
    %268 = vector.shape_cast %267 : vector<1x2x32xf32> to vector<2x32xf32>
    %c0_243 = arith.constant 0 : index
    %c0_244 = arith.constant 0 : index
    %c0_245 = arith.constant 0 : index
    %269 = vector.load %arg2[%c0_243, %c0_244, %c0_245] : memref<2x32x32xf32, #tpu.memory_space<vmem>>, vector<1x32x32xf32>
    %270 = vector.shape_cast %269 : vector<1x32x32xf32> to vector<32x32xf32>
    %cst_246 = arith.constant dense<0.000000e+00> : vector<2x32xf32>
    %271 = tpu.matmul %268, %270, %cst_246 {dimension_numbers = #tpu.dot_dimension_numbers<[1], [0], [0], [1], [0, 0, 1, 1], [], []>} : vector<2x32xf32>, vector<32x32xf32>, vector<2x32xf32> -> vector<2x32xf32>
    %272 = arith.addf %266, %271 : vector<2x32xf32>
    %cst_247 = arith.constant 0.000000e+00 : f32
    %273 = vector.broadcast %cst_247 : f32 to vector<2x32xf32>
    %274 = arith.maximumf %272, %273 : vector<2x32xf32>
    %c0_248 = arith.constant 0 : index
    %c0_249 = arith.constant 0 : index
    %c0_250 = arith.constant 0 : index
    %275 = vector.load %arg5[%c0_248, %c0_249, %c0_250] : memref<2x2x32xf32, #tpu.memory_space<vmem>>, vector<1x2x32xf32>
    %276 = vector.shape_cast %275 : vector<1x2x32xf32> to vector<2x32xf32>
    %277 = vector.shape_cast %274 : vector<2x32xf32> to vector<1x2x32xf32>
    tpu.vector_store %arg5[%c0_248, %c0_249, %c0_250], %277 {strides = array<i32>} : memref<2x2x32xf32, #tpu.memory_space<vmem>>, vector<1x2x32xf32>,
    %c0_251 = arith.constant 0 : index
    %c0_252 = arith.constant 0 : index
    %c0_253 = arith.constant 0 : index
    %278 = vector.load %arg5[%c0_251, %c0_252, %c0_253] : memref<2x2x32xf32, #tpu.memory_space<vmem>>, vector<1x2x32xf32>
    %279 = vector.shape_cast %278 : vector<1x2x32xf32> to vector<2x32xf32>
    %c1_254 = arith.constant 1 : index
    %c0_255 = arith.constant 0 : index
    %c0_256 = arith.constant 0 : index
    %280 = vector.load %arg5[%c1_254, %c0_255, %c0_256] : memref<2x2x32xf32, #tpu.memory_space<vmem>>, vector<1x2x32xf32>
    %281 = vector.shape_cast %280 : vector<1x2x32xf32> to vector<2x32xf32>
    %282 = arith.addf %279, %281 : vector<2x32xf32>
    %c1_257 = arith.constant 1 : index
    %c0_258 = arith.constant 0 : index
    %c0_259 = arith.constant 0 : index
    %283 = vector.load %arg2[%c1_257, %c0_258, %c0_259] : memref<2x32x32xf32, #tpu.memory_space<vmem>>, vector<1x32x32xf32>
    %284 = vector.shape_cast %283 : vector<1x32x32xf32> to vector<32x32xf32>
    %cst_260 = arith.constant dense<0.000000e+00> : vector<2x32xf32>
    %285 = tpu.matmul %282, %284, %cst_260 {dimension_numbers = #tpu.dot_dimension_numbers<[1], [0], [0], [1], [0, 0, 1, 1], [], []>} : vector<2x32xf32>, vector<32x32xf32>, vector<2x32xf32> -> vector<2x32xf32>
    %cst_261 = arith.constant 3.1622777 : f32
    %286 = vector.broadcast %cst_261 : f32 to vector<2x32xf32>
    %287 = arith.addf %286, %285 : vector<2x32xf32>
    %cst_262 = arith.constant 0.000000e+00 : f32
    %288 = vector.broadcast %cst_262 : f32 to vector<2x32xf32>
    %289 = arith.maximumf %287, %288 : vector<2x32xf32>
    %c1_263 = arith.constant 1 : index
    %c0_264 = arith.constant 0 : index
    %c0_265 = arith.constant 0 : index
    %290 = vector.load %arg5[%c1_263, %c0_264, %c0_265] : memref<2x2x32xf32, #tpu.memory_space<vmem>>, vector<1x2x32xf32>
    %291 = vector.shape_cast %290 : vector<1x2x32xf32> to vector<2x32xf32>
    %292 = vector.shape_cast %289 : vector<2x32xf32> to vector<1x2x32xf32>
    tpu.vector_store %arg5[%c1_263, %c0_264, %c0_265], %292 {strides = array<i32>} : memref<2x2x32xf32, #tpu.memory_space<vmem>>, vector<1x2x32xf32>,
    %c1_266 = arith.constant 1 : index
    %c0_267 = arith.constant 0 : index
    %c0_268 = arith.constant 0 : index
    %293 = vector.load %arg5[%c1_266, %c0_267, %c0_268] : memref<2x2x32xf32, #tpu.memory_space<vmem>>, vector<1x2x32xf32>
    %294 = vector.shape_cast %293 : vector<1x2x32xf32> to vector<2x32xf32>
    %295 = arith.index_cast %c7_i32 : i32 to index
    %c0_269 = arith.constant 0 : index
    %c0_270 = arith.constant 0 : index
    %296 = vector.load %arg3[%295, %c0_269, %c0_270] : memref<8x2x32xf32, #tpu.memory_space<vmem>>, vector<1x2x32xf32>
    %297 = vector.shape_cast %296 : vector<1x2x32xf32> to vector<2x32xf32>
    %298 = vector.shape_cast %294 : vector<2x32xf32> to vector<1x2x32xf32>
    tpu.vector_store %arg3[%295, %c0_269, %c0_270], %298 {strides = array<i32>} : memref<8x2x32xf32, #tpu.memory_space<vmem>>, vector<1x2x32xf32>,
    %c8_i32 = arith.constant 8 : i32
    %c0_i32_271 = arith.constant 0 : i32
    %299 = arith.cmpi eq, %arg0, %c0_i32_271 : i32
    %300 = arith.extui %299 : i1 to i32
    %c0_i32_272 = arith.constant 0 : i32
    %301 = arith.cmpi ne, %300, %c0_i32_272 : i32
    scf.if %301 {
      %c0_273 = arith.constant 0 : index
      %c0_274 = arith.constant 0 : index
      %c0_275 = arith.constant 0 : index
      %302 = vector.load %arg5[%c0_273, %c0_274, %c0_275] : memref<2x2x32xf32, #tpu.memory_space<vmem>>, vector<2x2x32xf32>
      %c0_276 = arith.constant 0 : index
      %c0_277 = arith.constant 0 : index
      %c0_278 = arith.constant 0 : index
      %303 = vector.load %arg4[%c0_276, %c0_277, %c0_278] : memref<2x2x32xf32, #tpu.memory_space<vmem>>, vector<2x2x32xf32>
      tpu.vector_store %arg4[%c0_276, %c0_277, %c0_278], %302 {strides = array<i32>} : memref<2x2x32xf32, #tpu.memory_space<vmem>>, vector<2x2x32xf32>,
    } else {
    }
    return
  }
  func.func @transform_0(%arg0: i32) -> (i32, i32, i32) {
    %c0_i32 = arith.constant 0 : i32
    %c0_i32_0 = arith.constant 0 : i32
    %c0_i32_1 = arith.constant 0 : i32
    return %arg0, %c0_i32, %c0_i32_0 : i32, i32, i32
  }
  func.func @transform_1(%arg0: i32) -> (i32, i32, i32) {
    %c0_i32 = arith.constant 0 : i32
    %c0_i32_0 = arith.constant 0 : i32
    %c0_i32_1 = arith.constant 0 : i32
    %c0_i32_2 = arith.constant 0 : i32
    return %c0_i32, %c0_i32_0, %c0_i32_1 : i32, i32, i32
  }
  func.func @transform_2(%arg0: i32) -> (i32, i32, i32) {
    %c0_i32 = arith.constant 0 : i32
    %c0_i32_0 = arith.constant 0 : i32
    %c0_i32_1 = arith.constant 0 : i32
    return %arg0, %c0_i32, %c0_i32_0 : i32, i32, i32
  }
  func.func @transform_3(%arg0: i32) -> (i32, i32, i32) {
    %c0_i32 = arith.constant 0 : i32
    %c0_i32_0 = arith.constant 0 : i32
    %c0_i32_1 = arith.constant 0 : i32
    %c0_i32_2 = arith.constant 0 : i32
    return %c0_i32, %c0_i32_0, %c0_i32_1 : i32, i32, i32
  }
}

</mosaic_0001>

<bundles_post_ra>
// kernel: tpu_custom_call.1
= control target key start
LH: loop header
LB: loop body
LE: loop exit
PB: predicated region body
PF: predicated region fallthrough
CT: control target
= control target key end

     0   :  { %9 = vsyncpa [#allocation4], 0  ;;  %s2165_s0 = inlined_call_operand.hbm [shape: f32[8,2,32], index: 0, kind: input, shape index: {}]   ;;  %s2166_s1 = inlined_call_operand.hbm [shape: f32[2,32,32], index: 1, kind: input, shape index: {}]   ;;  %s2167_s2 = inlined_call_operand.hbm [shape: f32[8,2,32], index: 2, kind: output, shape index: {0}]   ;;  %s2168_s3 = inlined_call_operand.hbm [shape: f32[2,2,32], index: 3, kind: output, shape index: {1}]  }
   0x1   :  { %10 = vsyncpa [#allocation7], 0 }
   0x2   :  { %11 = vsyncpa [#allocation5], 0 }
   0x3   :  { %12 = vsyncpa [#allocation10], 0  ;;  %s1920_s12 = smov [#allocation3]   ;;  %s1824_s16 = scalar_lea.hbm %s2165_s0, 256 }
   0x4   :  { %s18_s13 = sshll.u32 %s1920_s12, 4  ;;  %p1825_p0 = scmp.ne.s32.totalorder %s2165_s0, %s1824_s16  ;;  %s19_s13 = int_to_ptr.vmem [resolvable:$true] %s18_s13 }
   0x5   :  { %p1828_p1 = scmp.lt.u32.totalorder %s1824_s16, %s2165_s0 }
   0x7   :  { %p1830_p2 = pnand %p1828_p1, %p1825_p0 }
   0x9   :  { %1833 = shalt.err (!%p1830_p2)
}
   0xa   :  { %s1834_s21 = scalar_lea.vmem %s19_s13, 256  ;;  %p1839_p4 = scmp.lt.s32.totalorder %s19_s13, %s19_s13 }
   0xb   :  { %p1835_p3 = scmp.ne.s32.totalorder %s19_s13, %s1834_s21  ;;  %p1840_p5 = scmp.lt.s32.totalorder %s1834_s21, %s1834_s21 }
   0xd   :  { %p1841_p6 = por %p1840_p5, %p1839_p4 }
   0xf   :  { %p1842_p7 = pnand %p1841_p6, %p1835_p3 }
  0x11   :  { %1845 = shalt.err (!%p1842_p7)
}
  0x12   :  { %s1921_s22 = smov 32   ;;  %s1922_s23 = smov 2  }
  0x13   :  { %24 = dma.hbm_to_vmem [thread:$0]  %s2165_s0, 256, %s19_s13, [#allocation4], %s1921_s22, %s1921_s22, %s1922_s23  }
  0x14   :  { %s1923_s26 = smov [#allocation6]   ;;  %s1846_s30 = scalar_lea.hbm %s2166_s1, 1024 }
  0x15   :  { %s30_s27 = sshll.u32 %s1923_s26, 4  ;;  %p1847_p8 = scmp.ne.s32.totalorder %s2166_s1, %s1846_s30  ;;  %s31_s27 = int_to_ptr.vmem [resolvable:$true] %s30_s27 }
  0x16   :  { %p1850_p9 = scmp.lt.u32.totalorder %s1846_s30, %s2166_s1 }
  0x18   :  { %p1852_p10 = pnand %p1850_p9, %p1847_p8 }
  0x1a   :  { %1855 = shalt.err (!%p1852_p10)
}
  0x1b   :  { %s1856_s8 = scalar_lea.vmem %s31_s27, 1024  ;;  %p1861_p12 = scmp.lt.s32.totalorder %s31_s27, %s31_s27 }
  0x1c   :  { %p1857_p11 = scmp.ne.s32.totalorder %s31_s27, %s1856_s8  ;;  %p1862_p13 = scmp.lt.s32.totalorder %s1856_s8, %s1856_s8 }
  0x1e   :  { %p1863_p0 = por %p1862_p13, %p1861_p12 }
  0x20   :  { %p1864_p1 = pnand %p1863_p0, %p1857_p11 }
  0x22   :  { %1867 = shalt.err (!%p1864_p1)
}
  0x23   :  { %s1924_s0 = smov 128   ;;  %s1925_s9 = smov 8  }
  0x24   :  { %36 = dma.hbm_to_vmem [thread:$0]  %s2166_s1, 1024, %s31_s27, [#allocation7], %s1924_s0, %s1924_s0, %s1925_s9  }
  0x25   :  { %1912 = dma.done.wait [#allocation4], 256  }
  0x26   :  { %1913 = vsyncadd [#allocation4], 4294967040 }
  0x27   :  { %1914 = dma.done.wait [#allocation7], 1024  }
  0x28   :  { %1915 = vsyncadd [#allocation7], 4294966272  ;;  %vm47_vm0 = vcmask 254976   ;;  %v1926_v0 = vmov 0.0|0.0   ;;  %vm1927_vm1 = vmmov 0   ;;  %v1928_v1 = vmov 0.0  }
  0x29   :  { %1717 = vmatprep.subr.bf16.mxu0 %v1926_v0  ;;  %1549 = vmatprep.mubr.msk.f32.mxu0 %vm1927_vm1, %v1928_v1  ;;  %48 = vst.msk [vmem:[#allocation2] sm:$0x3] %vm47_vm0, %v1928_v1  ;;  %49 = vst.msk [vmem:[#allocation2 + $0x2] sm:$0x3] %vm47_vm0, %v1928_v1  ;;  %v53_v2 = vld [vmem:[#allocation6] sm:$0xff]  ;;  %v54_v3 = vld [vmem:[#allocation6 + $0x8] sm:$0xff] }
  0x2a   :  { %1723 = vmatprep.subr.bf16.mxu1 %v1926_v0  ;;  %1560 = vmatprep.mubr.msk.f32.mxu1 %vm1927_vm1, %v1928_v1  ;;  %v55_v4 = vld [vmem:[#allocation6 + $0x10] sm:$0xff]  ;;  %v1988_v5 = vpack.c.bf16 %v54_v3, %v53_v2  ;;  %v56_v6 = vld [vmem:[#allocation6 + $0x18] sm:$0xff]  ;;  %vm57_vm2 = vcmask 261120   ;;  %v140_v9 = vld [vmem:[#allocation6 + $0x20] sm:$0xff]  ;;  %s1929_s1 = smov [#allocation8]   ;;  %s1930_s13 = smov [#allocation9]  }
  0x2b   :  { %v1991_v7 = vpack.c.bf16 %v56_v6, %v55_v4  ;;  %v141_v10 = vld [vmem:[#allocation6 + $0x28] sm:$0xff]  ;;  %v142_v11 = vld [vmem:[#allocation6 + $0x30] sm:$0xff]  ;;  %v143_v13 = vld [vmem:[#allocation6 + $0x38] sm:$0xff]  ;;  %s1416_s12 = sshll.u32 %s1929_s1, 4  ;;  %s1428_s14 = sshll.u32 %s1930_s13, 4  ;;  %s1417_s12 = int_to_ptr.vmem [resolvable:$true] %s1416_s12  ;;  %s2126_s14 = int_to_ptr.vmem [resolvable:$true] %s1428_s14 }
  0x2c   :  { %1719 = vmatpush3.bf16.msra.mxu0 %v1988_v5  ;;  %v2003_v12 = vpack.c.bf16 %v141_v10, %v140_v9  ;;  %v2006_v14 = vpack.c.bf16 %v143_v13, %v142_v11  ;;  %v50_v15 = vld [vmem:[#allocation3] sm:$0x3]  ;;  %v222_v25 = vld [vmem:[#allocation3 + $0x2] sm:$0x3]  ;;  %v391_v40 = vld [vmem:[#allocation3 + $0x4] sm:$0x3]  ;;  %p1873_p3 = scmp.lt.s32.totalorder %s1417_s12, %s1417_s12 }
  0x2d   :  { %1720 = vmatprep.subr.bf16.mxu0 %v1926_v0  ;;  %v51_v16 = vadd.f32 3.1622777, %v50_v15  ;;  %v223_v26 = vadd.f32 3.1622777, %v222_v25  ;;  %v392_v41 = vadd.f32 3.1622777, %v391_v40 }
  0x2e   :  { %1725 = vmatpush3.bf16.msra.mxu1 %v2003_v12  ;;  %v560_v55 = vld [vmem:[#allocation3 + $0x6] sm:$0x3]  ;;  %v729_v10 = vld [vmem:[#allocation3 + $0x8] sm:$0x3]  ;;  %s1868_s15 = scalar_lea.vmem %s1417_s12, 256 }
  0x2f   :  { %1726 = vmatprep.subr.bf16.mxu1 %v1926_v0  ;;  %v561_v56 = vadd.f32 3.1622777, %v560_v55  ;;  %v730_v11 = vadd.f32 3.1622777, %v729_v10  ;;  %v1236_v55 = vld [vmem:[#allocation3 + $0xe] sm:$0x3]  ;;  %p1869_p2 = scmp.ne.s32.totalorder %s1417_s12, %s1868_s15  ;;  %p1874_p4 = scmp.lt.s32.totalorder %s1868_s15, %s1868_s15 }
  0x30   :  { %1722 = vmatpush3.bf16.msra.mxu0 %v1991_v7  ;;  %v52_v8 = vld [vmem:[#allocation2] sm:$0x3]  ;;  %v137_v21 = vld [vmem:[#allocation2 + $0x2] sm:$0x3] }
  0x31   :  { %1729 = vmatprep.subr.bf16.mxu0 %v1926_v0  ;;  %p1875_p5 = por %p1874_p4, %p1873_p3 }
  0x32   :  { %1728 = vmatpush3.bf16.msra.mxu1 %v2006_v14 }
  0x33   :  { %1550 = vmatmul.mubr.msk.f32.vlgmr.msra.gmra.mrb[0].mxu0 %vm57_vm2, %v52_v8  ;;  %1735 = vmatprep.subr.bf16.mxu1 %v1926_v0  ;;  %p1876_p6 = pnand %p1875_p5, %p1869_p2 }
  0x34   :  { %1731 = vmatpush3.bf16.msra.mxu0 %v1988_v5  ;;  %1571 = vmatprep.mubr.msk.f32.mxu0 %vm1927_vm1, %v1928_v1 }
  0x35   :  { %1732 = vmatprep.subr.bf16.mxu0 %v1926_v0 }
  0x38   :  { %1734 = vmatpush3.bf16.msra.mxu0 %v1991_v7 }
  0x39   :  { %1741 = vmatprep.subr.bf16.mxu0 %v1926_v0 }
 0x106   :  { %v127_v17 = vpop.f32.mrb[0].mxu0 }
 0x107   :  { %v131_v18 = vadd.f32 %v127_v17, %v51_v16  ;;  %v1551_v19 = vpop.f32.mrb[1].mxu0 }
 0x109   :  { %v132_v20 = vmax.f32 %v131_v18, 0.0 }
 0x10b   :  { %134 = vst.msk [vmem:[#allocation2] sm:$0x3] %vm47_vm0, %v132_v20 }
 0x112   :  { %v224_v22 = vld [vmem:[#allocation2] sm:$0x3] }
 0x113   :  { %v135_v23 = vld [vmem:[#allocation2] sm:$0x3]  ;;  %1572 = vmatmul.mubr.msk.f32.vlgmr.msra.gmra.mrb[2].mxu0 %vm57_vm2, %v224_v22 }
 0x114   :  { %v138_v24 = vadd.f32 %v137_v21, %v135_v23  ;;  %1743 = vmatpush3.bf16.msra.mxu0 %v1988_v5  ;;  %1593 = vmatprep.mubr.msk.f32.mxu0 %vm1927_vm1, %v1928_v1 }
 0x115   :  { %1744 = vmatprep.subr.bf16.mxu0 %v1926_v0 }
 0x116   :  { %1561 = vmatmul.mubr.msk.f32.vlgmr.msra.gmra.mrb[0].mxu1 %vm57_vm2, %v138_v24 }
 0x117   :  { %1737 = vmatpush3.bf16.msra.mxu1 %v2003_v12  ;;  %1582 = vmatprep.mubr.msk.f32.mxu1 %vm1927_vm1, %v1928_v1 }
 0x118   :  { %1738 = vmatprep.subr.bf16.mxu1 %v1926_v0  ;;  %1746 = vmatpush3.bf16.msra.mxu0 %v1991_v7 }
 0x119   :  { %1753 = vmatprep.subr.bf16.mxu0 %v1926_v0 }
 0x11b   :  { %1740 = vmatpush3.bf16.msra.mxu1 %v2006_v14 }
 0x11c   :  { %1747 = vmatprep.subr.bf16.mxu1 %v1926_v0 }
 0x1e6   :  { %v298_v27 = vpop.f32.mrb[2].mxu0 }
 0x1e7   :  { %v302_v28 = vadd.f32 %v298_v27, %v223_v26  ;;  %v1573_v29 = vpop.f32.mrb[3].mxu0  ;;  %v898_v27 = vld [vmem:[#allocation3 + $0xa] sm:$0x3] }
 0x1e9   :  { %v213_v30 = vpop.f32.mrb[0].mxu1  ;;  %v303_v31 = vmax.f32 %v302_v28, 0.0  ;;  %v899_v28 = vadd.f32 3.1622777, %v898_v27 }
 0x1ea   :  { %v214_v32 = vadd.f32 3.1622777, %v213_v30  ;;  %v1562_v33 = vpop.f32.mrb[1].mxu1 }
 0x1eb   :  { %304 = vst.msk [vmem:[#allocation2] sm:$0x3] %vm47_vm0, %v303_v31 }
 0x1ec   :  { %v217_v34 = vmax.f32 %v214_v32, 0.0 }
 0x1ee   :  { %218 = vst.msk [vmem:[#allocation2 + $0x2] sm:$0x3] %vm47_vm0, %v217_v34 }
 0x1f2   :  { %v393_v35 = vld [vmem:[#allocation2] sm:$0x3] }
 0x1f3   :  { %1594 = vmatmul.mubr.msk.f32.vlgmr.msra.gmra.mrb[4].mxu0 %vm57_vm2, %v393_v35  ;;  %v305_v36 = vld [vmem:[#allocation2] sm:$0x3] }
 0x1f4   :  { %1755 = vmatpush3.bf16.msra.mxu0 %v1988_v5  ;;  %1615 = vmatprep.mubr.msk.f32.mxu0 %vm1927_vm1, %v1928_v1 }
 0x1f5   :  { %v306_v37 = vld [vmem:[#allocation2 + $0x2] sm:$0x3]  ;;  %1756 = vmatprep.subr.bf16.mxu0 %v1926_v0 }
 0x1f6   :  { %v219_v38 = vld [vmem:[#allocation2 + $0x2] sm:$0x3]  ;;  %v307_v39 = vadd.f32 %v306_v37, %v305_v36 }
 0x1f7   :  { %220 = vst.msk [vmem:[#allocation8] sm:$0x3] %vm47_vm0, %v219_v38 }
 0x1f8   :  { %1583 = vmatmul.mubr.msk.f32.vlgmr.msra.gmra.mrb[2].mxu1 %vm57_vm2, %v307_v39  ;;  %1758 = vmatpush3.bf16.msra.mxu0 %v1991_v7 }
 0x1f9   :  { %1749 = vmatpush3.bf16.msra.mxu1 %v2003_v12  ;;  %1604 = vmatprep.mubr.msk.f32.mxu1 %vm1927_vm1, %v1928_v1 }
 0x1fa   :  { %1750 = vmatprep.subr.bf16.mxu1 %v1926_v0  ;;  %1765 = vmatprep.subr.bf16.mxu0 %v1926_v0 }
 0x1fd   :  { %1752 = vmatpush3.bf16.msra.mxu1 %v2006_v14 }
 0x1fe   :  { %1759 = vmatprep.subr.bf16.mxu1 %v1926_v0 }
 0x2c6   :  { %v467_v42 = vpop.f32.mrb[4].mxu0 }
 0x2c7   :  { %v471_v43 = vadd.f32 %v467_v42, %v392_v41  ;;  %v1595_v44 = vpop.f32.mrb[5].mxu0 }
 0x2c9   :  { %v472_v45 = vmax.f32 %v471_v43, 0.0 }
 0x2cb   :  { %v381_v46 = vpop.f32.mrb[2].mxu1  ;;  %473 = vst.msk [vmem:[#allocation2] sm:$0x3] %vm47_vm0, %v472_v45 }
 0x2cc   :  { %v382_v47 = vadd.f32 3.1622777, %v381_v46  ;;  %v1584_v48 = vpop.f32.mrb[3].mxu1 }
 0x2ce   :  { %v385_v49 = vmax.f32 %v382_v47, 0.0 }
 0x2d0   :  { %386 = vst.msk [vmem:[#allocation2 + $0x2] sm:$0x3] %vm47_vm0, %v385_v49 }
 0x2d2   :  { %v562_v50 = vld [vmem:[#allocation2] sm:$0x3] }
 0x2d3   :  { %1616 = vmatmul.mubr.msk.f32.vlgmr.msra.gmra.mrb[6].mxu0 %vm57_vm2, %v562_v50  ;;  %v474_v52 = vld [vmem:[#allocation2] sm:$0x3] }
 0x2d4   :  { %1767 = vmatpush3.bf16.msra.mxu0 %v1988_v5  ;;  %1637 = vmatprep.mubr.msk.f32.mxu0 %vm1927_vm1, %v1928_v1 }
 0x2d5   :  { %1768 = vmatprep.subr.bf16.mxu0 %v1926_v0 }
 0x2d7   :  { %v387_v51 = vld [vmem:[#allocation2 + $0x2] sm:$0x3] }
 0x2d8   :  { %v475_v53 = vld [vmem:[#allocation2 + $0x2] sm:$0x3]  ;;  %389 = vst.msk [vmem:[#allocation8 + $0x2] sm:$0x3] %vm47_vm0, %v387_v51  ;;  %1770 = vmatpush3.bf16.msra.mxu0 %v1991_v7 }
 0x2d9   :  { %v476_v54 = vadd.f32 %v475_v53, %v474_v52  ;;  %1777 = vmatprep.subr.bf16.mxu0 %v1926_v0 }
 0x2db   :  { %1605 = vmatmul.mubr.msk.f32.vlgmr.msra.gmra.mrb[4].mxu1 %vm57_vm2, %v476_v54 }
 0x2dc   :  { %1761 = vmatpush3.bf16.msra.mxu1 %v2003_v12  ;;  %1626 = vmatprep.mubr.msk.f32.mxu1 %vm1927_vm1, %v1928_v1 }
 0x2dd   :  { %1762 = vmatprep.subr.bf16.mxu1 %v1926_v0 }
 0x2e0   :  { %1764 = vmatpush3.bf16.msra.mxu1 %v2006_v14 }
 0x2e1   :  { %1771 = vmatprep.subr.bf16.mxu1 %v1926_v0 }
 0x3a6   :  { %v636_v57 = vpop.f32.mrb[6].mxu0 }
 0x3a7   :  { %v640_v58 = vadd.f32 %v636_v57, %v561_v56  ;;  %v1617_v59 = vpop.f32.mrb[7].mxu0  ;;  %v1237_v56 = vadd.f32 3.1622777, %v1236_v55 }
 0x3a9   :  { %v641_v60 = vmax.f32 %v640_v58, 0.0 }
 0x3ab   :  { %642 = vst.msk [vmem:[#allocation2] sm:$0x3] %vm47_vm0, %v641_v60 }
 0x3ae   :  { %v550_v61 = vpop.f32.mrb[4].mxu1 }
 0x3af   :  { %v551_v62 = vadd.f32 3.1622777, %v550_v61  ;;  %v1606_v63 = vpop.f32.mrb[5].mxu1 }
 0x3b1   :  { %v554_v2 = vmax.f32 %v551_v62, 0.0 }
 0x3b2   :  { %v731_v3 = vld [vmem:[#allocation2] sm:$0x3] }
 0x3b3   :  { %555 = vst.msk [vmem:[#allocation2 + $0x2] sm:$0x3] %vm47_vm0, %v554_v2  ;;  %1638 = vmatmul.mubr.msk.f32.vlgmr.msra.gmra.mrb[8].mxu0 %vm57_vm2, %v731_v3  ;;  %v643_v6 = vld [vmem:[#allocation2] sm:$0x3] }
 0x3b4   :  { %1779 = vmatpush3.bf16.msra.mxu0 %v1988_v5  ;;  %1659 = vmatprep.mubr.msk.f32.mxu0 %vm1927_vm1, %v1928_v1 }
 0x3b5   :  { %1780 = vmatprep.subr.bf16.mxu0 %v1926_v0 }
 0x3b8   :  { %1782 = vmatpush3.bf16.msra.mxu0 %v1991_v7 }
 0x3b9   :  { %1789 = vmatprep.subr.bf16.mxu0 %v1926_v0 }
 0x3ba   :  { %v556_v4 = vld [vmem:[#allocation2 + $0x2] sm:$0x3] }
 0x3bb   :  { %v644_v8 = vld [vmem:[#allocation2 + $0x2] sm:$0x3]  ;;  %558 = vst.msk [vmem:[#allocation8 + $0x4] sm:$0x3] %vm47_vm0, %v556_v4 }
 0x3bc   :  { %v645_v9 = vadd.f32 %v644_v8, %v643_v6 }
 0x3be   :  { %1627 = vmatmul.mubr.msk.f32.vlgmr.msra.gmra.mrb[6].mxu1 %vm57_vm2, %v645_v9 }
 0x3bf   :  { %1773 = vmatpush3.bf16.msra.mxu1 %v2003_v12  ;;  %1648 = vmatprep.mubr.msk.f32.mxu1 %vm1927_vm1, %v1928_v1 }
 0x3c0   :  { %1774 = vmatprep.subr.bf16.mxu1 %v1926_v0 }
 0x3c3   :  { %1776 = vmatpush3.bf16.msra.mxu1 %v2006_v14 }
 0x3c4   :  { %1783 = vmatprep.subr.bf16.mxu1 %v1926_v0 }
 0x486   :  { %v805_v13 = vpop.f32.mrb[8].mxu0 }
 0x487   :  { %v809_v15 = vadd.f32 %v805_v13, %v730_v11  ;;  %v1639_v16 = vpop.f32.mrb[9].mxu0 }
 0x489   :  { %v810_v17 = vmax.f32 %v809_v15, 0.0 }
 0x48b   :  { %811 = vst.msk [vmem:[#allocation2] sm:$0x3] %vm47_vm0, %v810_v17 }
 0x491   :  { %v719_v18 = vpop.f32.mrb[6].mxu1 }
 0x492   :  { %v720_v19 = vadd.f32 3.1622777, %v719_v18  ;;  %v1628_v20 = vpop.f32.mrb[7].mxu1  ;;  %v900_v22 = vld [vmem:[#allocation2] sm:$0x3] }
 0x493   :  { %1660 = vmatmul.mubr.msk.f32.vlgmr.msra.gmra.mrb[10].mxu0 %vm57_vm2, %v900_v22  ;;  %v812_v24 = vld [vmem:[#allocation2] sm:$0x3] }
 0x494   :  { %v723_v21 = vmax.f32 %v720_v19, 0.0  ;;  %1791 = vmatpush3.bf16.msra.mxu0 %v1988_v5  ;;  %1681 = vmatprep.mubr.msk.f32.mxu0 %vm1927_vm1, %v1928_v1 }
 0x495   :  { %1792 = vmatprep.subr.bf16.mxu0 %v1926_v0 }
 0x496   :  { %724 = vst.msk [vmem:[#allocation2 + $0x2] sm:$0x3] %vm47_vm0, %v723_v21 }
 0x498   :  { %1794 = vmatpush3.bf16.msra.mxu0 %v1991_v7 }
 0x499   :  { %1801 = vmatprep.subr.bf16.mxu0 %v1926_v0 }
 0x49d   :  { %v725_v23 = vld [vmem:[#allocation2 + $0x2] sm:$0x3] }
 0x49e   :  { %v813_v25 = vld [vmem:[#allocation2 + $0x2] sm:$0x3]  ;;  %727 = vst.msk [vmem:[#allocation8 + $0x6] sm:$0x3] %vm47_vm0, %v725_v23 }
 0x49f   :  { %v814_v26 = vadd.f32 %v813_v25, %v812_v24 }
 0x4a1   :  { %1649 = vmatmul.mubr.msk.f32.vlgmr.msra.gmra.mrb[8].mxu1 %vm57_vm2, %v814_v26 }
 0x4a2   :  { %1785 = vmatpush3.bf16.msra.mxu1 %v2003_v12  ;;  %1670 = vmatprep.mubr.msk.f32.mxu1 %vm1927_vm1, %v1928_v1 }
 0x4a3   :  { %1786 = vmatprep.subr.bf16.mxu1 %v1926_v0 }
 0x4a6   :  { %1788 = vmatpush3.bf16.msra.mxu1 %v2006_v14 }
 0x4a7   :  { %1795 = vmatprep.subr.bf16.mxu1 %v1926_v0 }
 0x566   :  { %v974_v29 = vpop.f32.mrb[10].mxu0 }
 0x567   :  { %v978_v30 = vadd.f32 %v974_v29, %v899_v28  ;;  %v1661_v31 = vpop.f32.mrb[11].mxu0 }
 0x569   :  { %v979_v32 = vmax.f32 %v978_v30, 0.0 }
 0x56b   :  { %980 = vst.msk [vmem:[#allocation2] sm:$0x3] %vm47_vm0, %v979_v32 }
 0x572   :  { %v1069_v36 = vld [vmem:[#allocation2] sm:$0x3] }
 0x573   :  { %1682 = vmatmul.mubr.msk.f32.vlgmr.msra.gmra.mrb[12].mxu0 %vm57_vm2, %v1069_v36  ;;  %v981_v39 = vld [vmem:[#allocation2] sm:$0x3] }
 0x574   :  { %v888_v33 = vpop.f32.mrb[8].mxu1  ;;  %1803 = vmatpush3.bf16.msra.mxu0 %v1988_v5  ;;  %1703 = vmatprep.mubr.msk.f32.mxu0 %vm1927_vm1, %v1928_v1  ;;  %v1067_v5 = vld [vmem:[#allocation3 + $0xc] sm:$0x3] }
 0x575   :  { %v889_v34 = vadd.f32 3.1622777, %v888_v33  ;;  %v1650_v35 = vpop.f32.mrb[9].mxu1  ;;  %1804 = vmatprep.subr.bf16.mxu0 %v1926_v0 }
 0x577   :  { %v892_v37 = vmax.f32 %v889_v34, 0.0 }
 0x578   :  { %1806 = vmatpush3.bf16.msra.mxu0 %v1991_v7  ;;  %v1068_v7 = vadd.f32 3.1622777, %v1067_v5 }
 0x579   :  { %893 = vst.msk [vmem:[#allocation2 + $0x2] sm:$0x3] %vm47_vm0, %v892_v37 }
 0x580   :  { %v894_v38 = vld [vmem:[#allocation2 + $0x2] sm:$0x3] }
 0x581   :  { %v982_v40 = vld [vmem:[#allocation2 + $0x2] sm:$0x3]  ;;  %896 = vst.msk [vmem:[#allocation8 + $0x8] sm:$0x3] %vm47_vm0, %v894_v38 }
 0x582   :  { %v983_v41 = vadd.f32 %v982_v40, %v981_v39 }
 0x584   :  { %1671 = vmatmul.mubr.msk.f32.vlgmr.msra.gmra.mrb[10].mxu1 %vm57_vm2, %v983_v41 }
 0x585   :  { %1797 = vmatpush3.bf16.msra.mxu1 %v2003_v12  ;;  %1692 = vmatprep.mubr.msk.f32.mxu1 %vm1927_vm1, %v1928_v1 }
 0x586   :  { %1798 = vmatprep.subr.bf16.mxu1 %v1926_v0 }
 0x589   :  { %1800 = vmatpush3.bf16.msra.mxu1 %v2006_v14 }
 0x58a   :  { %1807 = vmatprep.subr.bf16.mxu1 %v1926_v0 }
 0x646   :  { %v1143_v42 = vpop.f32.mrb[12].mxu0 }
 0x647   :  { %v1147_v43 = vadd.f32 %v1143_v42, %v1068_v7  ;;  %v1683_v44 = vpop.f32.mrb[13].mxu0 }
 0x649   :  { %v1148_v45 = vmax.f32 %v1147_v43, 0.0 }
 0x64b   :  { %1149 = vst.msk [vmem:[#allocation2] sm:$0x3] %vm47_vm0, %v1148_v45 }
 0x652   :  { %v1238_v47 = vld [vmem:[#allocation2] sm:$0x3] }
 0x653   :  { %1704 = vmatmul.mubr.msk.f32.vlgmr.msra.gmra.mrb[14].mxu0 %vm57_vm2, %v1238_v47  ;;  %v1150_v52 = vld [vmem:[#allocation2] sm:$0x3] }
 0x657   :  { %v1057_v46 = vpop.f32.mrb[10].mxu1 }
 0x658   :  { %v1058_v48 = vadd.f32 3.1622777, %v1057_v46  ;;  %v1672_v49 = vpop.f32.mrb[11].mxu1 }
 0x65a   :  { %v1061_v50 = vmax.f32 %v1058_v48, 0.0 }
 0x65c   :  { %1062 = vst.msk [vmem:[#allocation2 + $0x2] sm:$0x3] %vm47_vm0, %v1061_v50 }
 0x663   :  { %v1063_v51 = vld [vmem:[#allocation2 + $0x2] sm:$0x3] }
 0x664   :  { %v1151_v53 = vld [vmem:[#allocation2 + $0x2] sm:$0x3]  ;;  %1065 = vst.msk [vmem:[#allocation8 + $0xa] sm:$0x3] %vm47_vm0, %v1063_v51 }
 0x665   :  { %v1152_v54 = vadd.f32 %v1151_v53, %v1150_v52 }
 0x667   :  { %1693 = vmatmul.mubr.msk.f32.vlgmr.msra.gmra.mrb[12].mxu1 %vm57_vm2, %v1152_v54 }
 0x668   :  { %1809 = vmatpush3.bf16.msra.mxu1 %v2003_v12  ;;  %1714 = vmatprep.mubr.msk.f32.mxu1 %vm1927_vm1, %v1928_v1 }
 0x669   :  { %1810 = vmatprep.subr.bf16.mxu1 %v1926_v0 }
 0x66c   :  { %1812 = vmatpush3.bf16.msra.mxu1 %v2006_v14 }
 0x726   :  { %v1312_v57 = vpop.f32.mrb[14].mxu0 }
 0x727   :  { %v1316_v58 = vadd.f32 %v1312_v57, %v1237_v56  ;;  %v1705_v59 = vpop.f32.mrb[15].mxu0 }
 0x729   :  { %v1317_v60 = vmax.f32 %v1316_v58, 0.0 }
 0x72b   :  { %1318 = vst.msk [vmem:[#allocation2] sm:$0x3] %vm47_vm0, %v1317_v60 }
 0x732   :  { %v1407_v61 = vld [vmem:[#allocation2] sm:$0x3] }
 0x733   :  { %1409 = vst.msk [vmem:[#allocation9] sm:$0x3] %vm47_vm0, %v1407_v61  ;;  %v1319_v0 = vld [vmem:[#allocation2] sm:$0x3] }
 0x73a   :  { %v1226_v62 = vpop.f32.mrb[12].mxu1 }
 0x73b   :  { %v1227_v12 = vadd.f32 3.1622777, %v1226_v62  ;;  %v1694_v63 = vpop.f32.mrb[13].mxu1 }
 0x73d   :  { %v1230_v2 = vmax.f32 %v1227_v12, 0.0 }
 0x73f   :  { %1231 = vst.msk [vmem:[#allocation2 + $0x2] sm:$0x3] %vm47_vm0, %v1230_v2 }
 0x746   :  { %v1320_v1 = vld [vmem:[#allocation2 + $0x2] sm:$0x3] }
 0x747   :  { %v1232_v14 = vld [vmem:[#allocation2 + $0x2] sm:$0x3]  ;;  %v1321_v3 = vadd.f32 %v1320_v1, %v1319_v0 }
 0x748   :  { %1234 = vst.msk [vmem:[#allocation8 + $0xc] sm:$0x3] %vm47_vm0, %v1232_v14 }
 0x749   :  { %1715 = vmatmul.mubr.msk.f32.vlgmr.msra.gmra.mrb[14].mxu1 %vm57_vm2, %v1321_v3 }
 0x81c   :  { %v1395_v4 = vpop.f32.mrb[14].mxu1 }
 0x81d   :  { %v1396_v6 = vadd.f32 3.1622777, %v1395_v4  ;;  %v1716_v8 = vpop.f32.mrb[15].mxu1 }
 0x81f   :  { %v1399_v9 = vmax.f32 %v1396_v6, 0.0 }
 0x821   :  { %1400 = vst.msk [vmem:[#allocation2 + $0x2] sm:$0x3] %vm47_vm0, %v1399_v9 }
 0x828   :  { %v1401_v10 = vld [vmem:[#allocation2 + $0x2] sm:$0x3] }
 0x829   :  { %v1408_v11 = vld [vmem:[#allocation2 + $0x2] sm:$0x3]  ;;  %1403 = vst.msk [vmem:[#allocation8 + $0xe] sm:$0x3] %vm47_vm0, %v1401_v10 }
 0x82a   :  { %1410 = vst.msk [vmem:[#allocation9 + $0x2] sm:$0x3] %vm47_vm0, %v1408_v11 }
 0x82b   :  { %1879 = shalt.err (!%p1876_p6)
}
 0x82c   :  { %s1880_s18 = scalar_lea.hbm %s2167_s2, 256 }
 0x82d   :  { %p1881_p7 = scmp.ne.s32.totalorder %s2167_s2, %s1880_s18  ;;  %p1884_p8 = scmp.lt.u32.totalorder %s1880_s18, %s2167_s2 }
 0x82f   :  { %p1886_p9 = pnand %p1884_p8, %p1881_p7 }
 0x831   :  { %1889 = shalt.err (!%p1886_p9)
}
 0x832   :  { %1422 = dma.vmem_to_hbm [thread:$0]  %s1417_s12, 256, %s2167_s2, [#allocation5], %s1921_s22, %s1921_s22, %s1922_s23  }
 0x833   :  { %s1890_s27 = scalar_lea.vmem %s2126_s14, 64  ;;  %p1895_p11 = scmp.lt.s32.totalorder %s2126_s14, %s2126_s14 }
 0x834   :  { %p1891_p10 = scmp.ne.s32.totalorder %s2126_s14, %s1890_s27  ;;  %p1896_p12 = scmp.lt.s32.totalorder %s1890_s27, %s1890_s27 }
 0x836   :  { %p1897_p13 = por %p1896_p12, %p1895_p11 }
 0x838   :  { %p1898_p0 = pnand %p1897_p13, %p1891_p10 }
 0x83a   :  { %1901 = shalt.err (!%p1898_p0)
}
 0x83b   :  { %s1902_s30 = scalar_lea.hbm %s2168_s3, 64 }
 0x83c   :  { %p1903_p1 = scmp.ne.s32.totalorder %s2168_s3, %s1902_s30  ;;  %p1906_p2 = scmp.lt.u32.totalorder %s1902_s30, %s2168_s3 }
 0x83e   :  { %p1908_p3 = pnand %p1906_p2, %p1903_p1 }
 0x840   :  { %1911 = shalt.err (!%p1908_p3)
}
 0x841   :  { %1434 = dma.vmem_to_hbm [thread:$0]  %s2126_s14, 64, %s2168_s3, [#allocation10], %s1921_s22, %s1921_s22, %s1922_s23  }
 0x842   :  { %1916 = dma.done.wait [#allocation5], 256  }
 0x843   :  { %1917 = vsyncadd [#allocation5], 4294967040 }
 0x844   :  { %1918 = dma.done.wait [#allocation10], 64  }
 0x845   :  { %1919 = vsyncadd [#allocation10], 4294967232 }
 0x846   :  { %1441 = vsyncpa [#allocation4], 1 }
 0x847   :  { %1442 = vsyncpa [#allocation7], 1 }
 0x848   :  { %1443 = vsyncpa [#allocation5], 1 }
 0x849   :  { %1444 = vsyncpa [#allocation10], 1 }

</bundles_post_ra>
